<compile_context>
chip_gen: v5e
topology: v5e:2x2
jax: 0.10.0
libtpu: 0.0.40
codegen_flags: <defaults>
</compile_context>

<pallas_src>
import functools
import math

import jax
import jax.numpy as jnp
from jax.experimental import pallas as pl
from jax.experimental.pallas import tpu as pltpu

# ----------------------------- problem sizes -------------------------------
B = 2          # batch
C_IN = 4       # input channels to base_model
H = W = 8      # spatial
S = H * W      # attention sequence length (= H*W) = 64
E = 32         # embed_dim
NH = 4         # num_heads
D_HEAD = E // NH
BS = B * S     # 128 -> one full lane group

# Packed-weight slab layout (see pack_params):
#   rows [0, 3E)   : Wqkv^T (3E, E)  (q rows pre-scaled) | col E: bqkv^T (3E, 1)
#   rows [3E, 4E)  : (wo@wp)^T (E,E)                     | col E: b_op^T (E, 1)
#   rows [4E, 5E)  : Wb^T   (E, C_IN)                    | col E: bb^T   (E, 1)
PACK_ROWS = 5 * E          # 160 (multiple of 8)
PACK_COLS = 128            # lane-dense single DMA


# ------------------------------- kernel ------------------------------------
def _caware_kernel(x_ref,    # (C_IN, B*S)  channel-major, batch lane-packed
                   w_ref,    # (PACK_ROWS, PACK_COLS) packed weights/biases
                   o_ref,    # (E, B*S)     channel-major, batch lane-packed
                   ctx_ref,  # (E, B*S) f32 VMEM scratch: per-head contexts
                   *, batch, c_in, embed_dim, num_heads, head_dim, seq):
    e = embed_dim
    # Static slices of the single packed-weight slab (one DMA for everything).
    wqkv_t = w_ref[0:3 * e, 0:e]            # (3E, E)  q rows already scaled
    bqkv_t = w_ref[0:3 * e, e:e + 1]        # (3E, 1)
    w_op_t = w_ref[3 * e:4 * e, 0:e]        # (E, E)   = (wo @ wp)^T
    b_op_t = w_ref[3 * e:4 * e, e:e + 1]    # (E, 1)   = (bo @ wp + bp)^T
    wb_t   = w_ref[4 * e:5 * e, 0:c_in]     # (E, C_IN)
    bb_t   = w_ref[4 * e:5 * e, e:e + 1]    # (E, 1)

    x_all = x_ref[...]                                               # (C_IN, B*S)

    # base_model: 1x1 conv + ReLU, full 128-lane operand, bias added once.
    feat_t = jnp.dot(wb_t, x_all, preferred_element_type=jnp.float32) + bb_t
    feat_t = jnp.maximum(feat_t, 0.0)                                # (E, B*S)

    # Fused q/k/v projection (single MXU push over all batches/lanes).
    qkv_t = (jnp.dot(wqkv_t, feat_t, preferred_element_type=jnp.float32)
             + bqkv_t)                                               # (3E, B*S)

    # Attention: 64-lane batch halves, 8-row (sublane-aligned) head slices.
    for b in range(batch):                                           # static (B=2)
        l0 = b * seq
        for h in range(num_heads):                                   # static (NH=4)
            r0 = h * head_dim
            qh_t = qkv_t[r0:r0 + head_dim, l0:l0 + seq]              # (d, S) scaled
            kh_t = qkv_t[e + r0:e + r0 + head_dim, l0:l0 + seq]      # (d, S)
            vh_t = qkv_t[2 * e + r0:2 * e + r0 + head_dim, l0:l0 + seq]

            # Transposed scores: s_t[k, q] = sum_d k[d,k] * q[d,q].
            # Only one tiny (d, S) transpose; both matmuls stay plain NN.
            s_t = jnp.dot(kh_t.T, qh_t,
                          preferred_element_type=jnp.float32)        # (S, S)

            # Softmax over keys = sublane axis.
            m = jnp.max(s_t, axis=0, keepdims=True)                  # (1, S)
            p_t = jnp.exp(s_t - m)                                   # unnormalized
            denom = jnp.sum(p_t, axis=0, keepdims=True)              # (1, S)
            r = pl.reciprocal(denom, approx=True)                    # EUP vrcp
            r = r * (2.0 - denom * r)                                # 1 Newton step

            # Channel-major context; normalize the small (d, S) tile, not p_t.
            ctx_t = jnp.dot(vh_t, p_t,
                            preferred_element_type=jnp.float32) * r  # (d, S)
            ctx_ref[r0:r0 + head_dim, l0:l0 + seq] = ctx_t

    # One K=E output projection over all heads & batches, then folded bias +
    # residual with base features; single full-lane store.
    out_t = (jnp.dot(w_op_t, ctx_ref[...], preferred_element_type=jnp.float32)
             + b_op_t + feat_t)                                      # (E, B*S)
    o_ref[...] = out_t.astype(o_ref.dtype)


# ------------------------------- wrapper ------------------------------------
def pack_params(p):
    """One-time host-side folding/fusion/packing of all weights and biases."""
    scale = 1.0 / math.sqrt(D_HEAD)
    wq_s = p["wq"] * scale                  # fold softmax scale into q weights
    bq_s = p["bq"] * scale                  # ... and q bias (reference scales q+bias)
    wqkv_t = jnp.concatenate([wq_s, p["wk"], p["wv"]], axis=1).T      # (3E, E)
    bqkv_t = jnp.concatenate([bq_s, p["bk"], p["bv"]], axis=1).T      # (3E, 1)
    w_op_t = (p["wo"] @ p["wp"]).T                                    # (E, E), transposed
    b_op_t = (p["bo"] @ p["wp"] + p["bp"]).T                          # (E, 1)
    wb_t   = p["wb"].T                                                # (E, C_IN)
    bb_t   = p["bb"].T                                                # (E, 1)

    wpk = jnp.zeros((PACK_ROWS, PACK_COLS), jnp.float32)
    wpk = wpk.at[0:3 * E, 0:E].set(wqkv_t)
    wpk = wpk.at[0:3 * E, E:E + 1].set(bqkv_t)
    wpk = wpk.at[3 * E:4 * E, 0:E].set(w_op_t)
    wpk = wpk.at[3 * E:4 * E, E:E + 1].set(b_op_t)
    wpk = wpk.at[4 * E:5 * E, 0:C_IN].set(wb_t)
    wpk = wpk.at[4 * E:5 * E, E:E + 1].set(bb_t)
    return wpk


def context_aware_model2(x_nchw, packed_w):
    """x_nchw: [B, C_IN, H, W] float32 -> [B, E, H, W] float32."""
    bx, cx, hx, wx = x_nchw.shape
    sx = hx * wx
    # Lane-pack the batch: (B, C, S) -> (C, B*S) so every pointwise / projection
    # stage and the output store run on full 128-lane operands. (Tiny host-side
    # transpose: pure layout plumbing.)
    x_cbs = jnp.transpose(x_nchw.reshape(bx, cx, sx), (1, 0, 2)).reshape(cx, bx * sx)

    kernel = functools.partial(
        _caware_kernel, batch=bx, c_in=cx, embed_dim=E,
        num_heads=NH, head_dim=D_HEAD, seq=sx)

    out_ebs = pl.pallas_call(
        kernel,
        out_shape=jax.ShapeDtypeStruct((E, bx * sx), jnp.float32),
        grid=(1,),                               # single invocation, whole problem
        in_specs=[
            pl.BlockSpec((cx, bx * sx), lambda i: (0, 0)),
            pl.BlockSpec((PACK_ROWS, PACK_COLS), lambda i: (0, 0)),
        ],
        out_specs=pl.BlockSpec((E, bx * sx), lambda i: (0, 0)),
        scratch_shapes=[pltpu.VMEM((E, bx * sx), jnp.float32)],
        compiler_params=pltpu.CompilerParams(
            dimension_semantics=("arbitrary",)),  # don't split tiny work
    )(x_cbs, packed_w)

    # (E, B*S) -> (B, E, H, W) : tiny host-side un-pack.
    return jnp.transpose(out_ebs.reshape(E, bx, sx), (1, 0, 2)).reshape(bx, E, hx, wx)


# --------------------------- pure-JAX reference -----------------------------
def reference(x_nchw, p):
    """Unfused reference (separate q/k/v, out_proj then proj_value)."""
    bx, cx, hx, wx = x_nchw.shape
    sx = hx * wx
    xs = jnp.transpose(x_nchw.reshape(bx, cx, sx), (0, 2, 1))       # (B,S,C)
    feat = jnp.maximum(xs @ p["wb"] + p["bb"], 0.0)                 # (B,S,E)
    q = feat @ p["wq"] + p["bq"]
    k = feat @ p["wk"] + p["bk"]
    v = feat @ p["wv"] + p["bv"]
    qh = q.reshape(bx, sx, NH, D_HEAD)
    kh = k.reshape(bx, sx, NH, D_HEAD)
    vh = v.reshape(bx, sx, NH, D_HEAD)
    scores = jnp.einsum("bqhd,bkhd->bhqk", qh, kh) / math.sqrt(D_HEAD)
    patt = jax.nn.softmax(scores, axis=-1)
    ctx = jnp.einsum("bhqk,bkhd->bqhd", patt, vh).reshape(bx, sx, E)
    attn = ctx @ p["wo"] + p["bo"]
    out = attn @ p["wp"] + p["bp"] + feat                           # (B,S,E)
    return jnp.transpose(out, (0, 2, 1)).reshape(bx, E, hx, wx)


# ------------------------------ param init ----------------------------------
def init_params(key):
    ks = jax.random.split(key, 12)
    n = lambda k, shp, scale: (scale * jax.random.normal(k, shp)).astype(jnp.float32)
    return {
        # base_model 1x1 conv (stored as (in, out): y = x @ W + b)
        "wb": n(ks[0], (C_IN, E), 0.5), "bb": n(ks[1], (1, E), 0.1),
        # MHA in_proj split into q/k/v (stored transposed vs PyTorch)
        "wq": n(ks[2], (E, E), 0.2), "bq": n(ks[3], (1, E), 0.05),
        "wk": n(ks[4], (E, E), 0.2), "bk": n(ks[5], (1, E), 0.05),
        "wv": n(ks[6], (E, E), 0.2), "bv": n(ks[7], (1, E), 0.05),
        # MHA out_proj
        "wo": n(ks[8], (E, E), 0.2), "bo": n(ks[9], (1, E), 0.05),
        # proj_value 1x1 conv
        "wp": n(ks[10], (E, E), 0.2), "bp": n(ks[11], (1, E), 0.05),
    }


if __name__ == "__main__":
    key = jax.random.PRNGKey(0)
    kx, kp = jax.random.split(key)
    x = jax.random.normal(kx, (B, C_IN, H, W), dtype=jnp.float32)
    params = init_params(kp)
    packed_w = pack_params(params)            # one-time fold/fuse/scale/pack

    out = jax.block_until_ready(context_aware_model2(x, packed_w))
    ref = jax.block_until_ready(reference(x, params))

    assert out.shape == (B, E, H, W), out.shape
    max_err = float(jnp.max(jnp.abs(out - ref)))
    assert jnp.allclose(out, ref, atol=5e-4, rtol=5e-4), max_err
    print("KERNEL_OK")
</pallas_src>

<mosaic_0001>
module attributes {stable_mosaic.version = 11 : i64} {
  func.func @_caware_kernel(%arg0: i32, %arg1: memref<4x128xf32, #tpu.memory_space<vmem>>, %arg2: memref<160x128xf32, #tpu.memory_space<vmem>>, %arg3: memref<32x128xf32, #tpu.memory_space<vmem>>, %arg4: memref<32x128xf32, #tpu.memory_space<vmem>>) attributes {dimension_semantics = [#tpu.dimension_semantics<arbitrary>], iteration_bounds = array<i64: 1>, scalar_prefetch = 0 : i64, scratch_operands = 1 : i64, tpu.core_type = #tpu.core_type<tc>, window_params = [{pipeline_mode = #tpu.pipeline_mode<synchronous>, transform_indices = @transform_0, window_bounds = array<i64: 4, 128>}, {pipeline_mode = #tpu.pipeline_mode<synchronous>, transform_indices = @transform_1, window_bounds = array<i64: 160, 128>}, {pipeline_mode = #tpu.pipeline_mode<synchronous>, transform_indices = @transform_2, window_bounds = array<i64: 32, 128>}]} {
    %c0 = arith.constant 0 : index
    %c0_0 = arith.constant 0 : index
    %0 = vector.load %arg2[%c0, %c0_0] : memref<160x128xf32, #tpu.memory_space<vmem>>, vector<96x32xf32>
    %c0_1 = arith.constant 0 : index
    %c32 = arith.constant 32 : index
    %1 = vector.load %arg2[%c0_1, %c32] : memref<160x128xf32, #tpu.memory_space<vmem>>, vector<96x1xf32>
    %c96 = arith.constant 96 : index
    %c0_2 = arith.constant 0 : index
    %2 = vector.load %arg2[%c96, %c0_2] : memref<160x128xf32, #tpu.memory_space<vmem>>, vector<32x32xf32>
    %c96_3 = arith.constant 96 : index
    %c32_4 = arith.constant 32 : index
    %3 = vector.load %arg2[%c96_3, %c32_4] : memref<160x128xf32, #tpu.memory_space<vmem>>, vector<32x1xf32>
    %c128 = arith.constant 128 : index
    %c0_5 = arith.constant 0 : index
    %4 = vector.load %arg2[%c128, %c0_5] : memref<160x128xf32, #tpu.memory_space<vmem>>, vector<32x4xf32>
    %c128_6 = arith.constant 128 : index
    %c32_7 = arith.constant 32 : index
    %5 = vector.load %arg2[%c128_6, %c32_7] : memref<160x128xf32, #tpu.memory_space<vmem>>, vector<32x1xf32>
    %c0_8 = arith.constant 0 : index
    %c0_9 = arith.constant 0 : index
    %6 = vector.load %arg1[%c0_8, %c0_9] : memref<4x128xf32, #tpu.memory_space<vmem>>, vector<4x128xf32>
    %cst = arith.constant dense<0.000000e+00> : vector<32x128xf32>
    %7 = tpu.matmul %4, %6, %cst {dimension_numbers = #tpu.dot_dimension_numbers<[1], [0], [0], [1], [0, 0, 1, 1], [], []>} : vector<32x4xf32>, vector<4x128xf32>, vector<32x128xf32> -> vector<32x128xf32>
    %8 = vector.broadcast %5 : vector<32x1xf32> to vector<32x128xf32>
    %9 = arith.addf %7, %8 : vector<32x128xf32>
    %cst_10 = arith.constant 0.000000e+00 : f32
    %10 = vector.broadcast %cst_10 : f32 to vector<32x128xf32>
    %11 = arith.maximumf %9, %10 : vector<32x128xf32>
    %cst_11 = arith.constant dense<0.000000e+00> : vector<96x128xf32>
    %12 = tpu.matmul %0, %11, %cst_11 {dimension_numbers = #tpu.dot_dimension_numbers<[1], [0], [0], [1], [0, 0, 1, 1], [], []>} : vector<96x32xf32>, vector<32x128xf32>, vector<96x128xf32> -> vector<96x128xf32>
    %13 = vector.broadcast %1 : vector<96x1xf32> to vector<96x128xf32>
    %14 = arith.addf %12, %13 : vector<96x128xf32>
    %15 = vector.extract_strided_slice %14 {offsets = [0, 0], sizes = [8, 64], strides = [1, 1]} : vector<96x128xf32> to vector<8x64xf32>
    %16 = vector.extract_strided_slice %14 {offsets = [32, 0], sizes = [8, 64], strides = [1, 1]} : vector<96x128xf32> to vector<8x64xf32>
    %17 = vector.extract_strided_slice %14 {offsets = [64, 0], sizes = [8, 64], strides = [1, 1]} : vector<96x128xf32> to vector<8x64xf32>
    %18 = tpu.transpose %16, [1, 0] : vector<8x64xf32> -> vector<64x8xf32>
    %cst_12 = arith.constant dense<0.000000e+00> : vector<64x64xf32>
    %19 = tpu.matmul %18, %15, %cst_12 {dimension_numbers = #tpu.dot_dimension_numbers<[1], [0], [0], [1], [0, 0, 1, 1], [], []>} : vector<64x8xf32>, vector<8x64xf32>, vector<64x64xf32> -> vector<64x64xf32>
    %cst_13 = arith.constant dense<0xFF800000> : vector<64xf32>
    %20 = vector.multi_reduction <maximumf>, %19, %cst_13 [0] : vector<64x64xf32> to vector<64xf32>
    %21 = vector.shape_cast %20 : vector<64xf32> to vector<1x64xf32>
    %22 = vector.broadcast %21 : vector<1x64xf32> to vector<64x64xf32>
    %23 = arith.subf %19, %22 : vector<64x64xf32>
    %24 = math.exp %23 : vector<64x64xf32>
    %cst_14 = arith.constant dense<0.000000e+00> : vector<64xf32>
    %25 = vector.multi_reduction <add>, %24, %cst_14 [0] : vector<64x64xf32> to vector<64xf32>
    %26 = vector.shape_cast %25 : vector<64xf32> to vector<1x64xf32>
    %27 = tpu.reciprocal %26 {approx = true} : vector<1x64xf32> -> vector<1x64xf32>
    %28 = arith.mulf %26, %27 : vector<1x64xf32>
    %cst_15 = arith.constant 2.000000e+00 : f32
    %29 = vector.broadcast %cst_15 : f32 to vector<1x64xf32>
    %30 = arith.subf %29, %28 : vector<1x64xf32>
    %31 = arith.mulf %27, %30 : vector<1x64xf32>
    %cst_16 = arith.constant dense<0.000000e+00> : vector<8x64xf32>
    %32 = tpu.matmul %17, %24, %cst_16 {dimension_numbers = #tpu.dot_dimension_numbers<[1], [0], [0], [1], [0, 0, 1, 1], [], []>} : vector<8x64xf32>, vector<64x64xf32>, vector<8x64xf32> -> vector<8x64xf32>
    %33 = vector.broadcast %31 : vector<1x64xf32> to vector<8x64xf32>
    %34 = arith.mulf %32, %33 : vector<8x64xf32>
    %c0_17 = arith.constant 0 : index
    %c0_18 = arith.constant 0 : index
    %35 = vector.load %arg4[%c0_17, %c0_18] : memref<32x128xf32, #tpu.memory_space<vmem>>, vector<8x64xf32>
    tpu.vector_store %arg4[%c0_17, %c0_18], %34 {strides = array<i32>} : memref<32x128xf32, #tpu.memory_space<vmem>>, vector<8x64xf32>,
    %36 = vector.extract_strided_slice %14 {offsets = [8, 0], sizes = [8, 64], strides = [1, 1]} : vector<96x128xf32> to vector<8x64xf32>
    %37 = vector.extract_strided_slice %14 {offsets = [40, 0], sizes = [8, 64], strides = [1, 1]} : vector<96x128xf32> to vector<8x64xf32>
    %38 = vector.extract_strided_slice %14 {offsets = [72, 0], sizes = [8, 64], strides = [1, 1]} : vector<96x128xf32> to vector<8x64xf32>
    %39 = tpu.transpose %37, [1, 0] : vector<8x64xf32> -> vector<64x8xf32>
    %cst_19 = arith.constant dense<0.000000e+00> : vector<64x64xf32>
    %40 = tpu.matmul %39, %36, %cst_19 {dimension_numbers = #tpu.dot_dimension_numbers<[1], [0], [0], [1], [0, 0, 1, 1], [], []>} : vector<64x8xf32>, vector<8x64xf32>, vector<64x64xf32> -> vector<64x64xf32>
    %cst_20 = arith.constant dense<0xFF800000> : vector<64xf32>
    %41 = vector.multi_reduction <maximumf>, %40, %cst_20 [0] : vector<64x64xf32> to vector<64xf32>
    %42 = vector.shape_cast %41 : vector<64xf32> to vector<1x64xf32>
    %43 = vector.broadcast %42 : vector<1x64xf32> to vector<64x64xf32>
    %44 = arith.subf %40, %43 : vector<64x64xf32>
    %45 = math.exp %44 : vector<64x64xf32>
    %cst_21 = arith.constant dense<0.000000e+00> : vector<64xf32>
    %46 = vector.multi_reduction <add>, %45, %cst_21 [0] : vector<64x64xf32> to vector<64xf32>
    %47 = vector.shape_cast %46 : vector<64xf32> to vector<1x64xf32>
    %48 = tpu.reciprocal %47 {approx = true} : vector<1x64xf32> -> vector<1x64xf32>
    %49 = arith.mulf %47, %48 : vector<1x64xf32>
    %cst_22 = arith.constant 2.000000e+00 : f32
    %50 = vector.broadcast %cst_22 : f32 to vector<1x64xf32>
    %51 = arith.subf %50, %49 : vector<1x64xf32>
    %52 = arith.mulf %48, %51 : vector<1x64xf32>
    %cst_23 = arith.constant dense<0.000000e+00> : vector<8x64xf32>
    %53 = tpu.matmul %38, %45, %cst_23 {dimension_numbers = #tpu.dot_dimension_numbers<[1], [0], [0], [1], [0, 0, 1, 1], [], []>} : vector<8x64xf32>, vector<64x64xf32>, vector<8x64xf32> -> vector<8x64xf32>
    %54 = vector.broadcast %52 : vector<1x64xf32> to vector<8x64xf32>
    %55 = arith.mulf %53, %54 : vector<8x64xf32>
    %c8 = arith.constant 8 : index
    %c0_24 = arith.constant 0 : index
    %56 = vector.load %arg4[%c8, %c0_24] : memref<32x128xf32, #tpu.memory_space<vmem>>, vector<8x64xf32>
    tpu.vector_store %arg4[%c8, %c0_24], %55 {strides = array<i32>} : memref<32x128xf32, #tpu.memory_space<vmem>>, vector<8x64xf32>,
    %57 = vector.extract_strided_slice %14 {offsets = [16, 0], sizes = [8, 64], strides = [1, 1]} : vector<96x128xf32> to vector<8x64xf32>
    %58 = vector.extract_strided_slice %14 {offsets = [48, 0], sizes = [8, 64], strides = [1, 1]} : vector<96x128xf32> to vector<8x64xf32>
    %59 = vector.extract_strided_slice %14 {offsets = [80, 0], sizes = [8, 64], strides = [1, 1]} : vector<96x128xf32> to vector<8x64xf32>
    %60 = tpu.transpose %58, [1, 0] : vector<8x64xf32> -> vector<64x8xf32>
    %cst_25 = arith.constant dense<0.000000e+00> : vector<64x64xf32>
    %61 = tpu.matmul %60, %57, %cst_25 {dimension_numbers = #tpu.dot_dimension_numbers<[1], [0], [0], [1], [0, 0, 1, 1], [], []>} : vector<64x8xf32>, vector<8x64xf32>, vector<64x64xf32> -> vector<64x64xf32>
    %cst_26 = arith.constant dense<0xFF800000> : vector<64xf32>
    %62 = vector.multi_reduction <maximumf>, %61, %cst_26 [0] : vector<64x64xf32> to vector<64xf32>
    %63 = vector.shape_cast %62 : vector<64xf32> to vector<1x64xf32>
    %64 = vector.broadcast %63 : vector<1x64xf32> to vector<64x64xf32>
    %65 = arith.subf %61, %64 : vector<64x64xf32>
    %66 = math.exp %65 : vector<64x64xf32>
    %cst_27 = arith.constant dense<0.000000e+00> : vector<64xf32>
    %67 = vector.multi_reduction <add>, %66, %cst_27 [0] : vector<64x64xf32> to vector<64xf32>
    %68 = vector.shape_cast %67 : vector<64xf32> to vector<1x64xf32>
    %69 = tpu.reciprocal %68 {approx = true} : vector<1x64xf32> -> vector<1x64xf32>
    %70 = arith.mulf %68, %69 : vector<1x64xf32>
    %cst_28 = arith.constant 2.000000e+00 : f32
    %71 = vector.broadcast %cst_28 : f32 to vector<1x64xf32>
    %72 = arith.subf %71, %70 : vector<1x64xf32>
    %73 = arith.mulf %69, %72 : vector<1x64xf32>
    %cst_29 = arith.constant dense<0.000000e+00> : vector<8x64xf32>
    %74 = tpu.matmul %59, %66, %cst_29 {dimension_numbers = #tpu.dot_dimension_numbers<[1], [0], [0], [1], [0, 0, 1, 1], [], []>} : vector<8x64xf32>, vector<64x64xf32>, vector<8x64xf32> -> vector<8x64xf32>
    %75 = vector.broadcast %73 : vector<1x64xf32> to vector<8x64xf32>
    %76 = arith.mulf %74, %75 : vector<8x64xf32>
    %c16 = arith.constant 16 : index
    %c0_30 = arith.constant 0 : index
    %77 = vector.load %arg4[%c16, %c0_30] : memref<32x128xf32, #tpu.memory_space<vmem>>, vector<8x64xf32>
    tpu.vector_store %arg4[%c16, %c0_30], %76 {strides = array<i32>} : memref<32x128xf32, #tpu.memory_space<vmem>>, vector<8x64xf32>,
    %78 = vector.extract_strided_slice %14 {offsets = [24, 0], sizes = [8, 64], strides = [1, 1]} : vector<96x128xf32> to vector<8x64xf32>
    %79 = vector.extract_strided_slice %14 {offsets = [56, 0], sizes = [8, 64], strides = [1, 1]} : vector<96x128xf32> to vector<8x64xf32>
    %80 = vector.extract_strided_slice %14 {offsets = [88, 0], sizes = [8, 64], strides = [1, 1]} : vector<96x128xf32> to vector<8x64xf32>
    %81 = tpu.transpose %79, [1, 0] : vector<8x64xf32> -> vector<64x8xf32>
    %cst_31 = arith.constant dense<0.000000e+00> : vector<64x64xf32>
    %82 = tpu.matmul %81, %78, %cst_31 {dimension_numbers = #tpu.dot_dimension_numbers<[1], [0], [0], [1], [0, 0, 1, 1], [], []>} : vector<64x8xf32>, vector<8x64xf32>, vector<64x64xf32> -> vector<64x64xf32>
    %cst_32 = arith.constant dense<0xFF800000> : vector<64xf32>
    %83 = vector.multi_reduction <maximumf>, %82, %cst_32 [0] : vector<64x64xf32> to vector<64xf32>
    %84 = vector.shape_cast %83 : vector<64xf32> to vector<1x64xf32>
    %85 = vector.broadcast %84 : vector<1x64xf32> to vector<64x64xf32>
    %86 = arith.subf %82, %85 : vector<64x64xf32>
    %87 = math.exp %86 : vector<64x64xf32>
    %cst_33 = arith.constant dense<0.000000e+00> : vector<64xf32>
    %88 = vector.multi_reduction <add>, %87, %cst_33 [0] : vector<64x64xf32> to vector<64xf32>
    %89 = vector.shape_cast %88 : vector<64xf32> to vector<1x64xf32>
    %90 = tpu.reciprocal %89 {approx = true} : vector<1x64xf32> -> vector<1x64xf32>
    %91 = arith.mulf %89, %90 : vector<1x64xf32>
    %cst_34 = arith.constant 2.000000e+00 : f32
    %92 = vector.broadcast %cst_34 : f32 to vector<1x64xf32>
    %93 = arith.subf %92, %91 : vector<1x64xf32>
    %94 = arith.mulf %90, %93 : vector<1x64xf32>
    %cst_35 = arith.constant dense<0.000000e+00> : vector<8x64xf32>
    %95 = tpu.matmul %80, %87, %cst_35 {dimension_numbers = #tpu.dot_dimension_numbers<[1], [0], [0], [1], [0, 0, 1, 1], [], []>} : vector<8x64xf32>, vector<64x64xf32>, vector<8x64xf32> -> vector<8x64xf32>
    %96 = vector.broadcast %94 : vector<1x64xf32> to vector<8x64xf32>
    %97 = arith.mulf %95, %96 : vector<8x64xf32>
    %c24 = arith.constant 24 : index
    %c0_36 = arith.constant 0 : index
    %98 = vector.load %arg4[%c24, %c0_36] : memref<32x128xf32, #tpu.memory_space<vmem>>, vector<8x64xf32>
    tpu.vector_store %arg4[%c24, %c0_36], %97 {strides = array<i32>} : memref<32x128xf32, #tpu.memory_space<vmem>>, vector<8x64xf32>,
    %99 = vector.extract_strided_slice %14 {offsets = [0, 64], sizes = [8, 64], strides = [1, 1]} : vector<96x128xf32> to vector<8x64xf32>
    %100 = vector.extract_strided_slice %14 {offsets = [32, 64], sizes = [8, 64], strides = [1, 1]} : vector<96x128xf32> to vector<8x64xf32>
    %101 = vector.extract_strided_slice %14 {offsets = [64, 64], sizes = [8, 64], strides = [1, 1]} : vector<96x128xf32> to vector<8x64xf32>
    %102 = tpu.transpose %100, [1, 0] : vector<8x64xf32> -> vector<64x8xf32>
    %cst_37 = arith.constant dense<0.000000e+00> : vector<64x64xf32>
    %103 = tpu.matmul %102, %99, %cst_37 {dimension_numbers = #tpu.dot_dimension_numbers<[1], [0], [0], [1], [0, 0, 1, 1], [], []>} : vector<64x8xf32>, vector<8x64xf32>, vector<64x64xf32> -> vector<64x64xf32>
    %cst_38 = arith.constant dense<0xFF800000> : vector<64xf32>
    %104 = vector.multi_reduction <maximumf>, %103, %cst_38 [0] : vector<64x64xf32> to vector<64xf32>
    %105 = vector.shape_cast %104 : vector<64xf32> to vector<1x64xf32>
    %106 = vector.broadcast %105 : vector<1x64xf32> to vector<64x64xf32>
    %107 = arith.subf %103, %106 : vector<64x64xf32>
    %108 = math.exp %107 : vector<64x64xf32>
    %cst_39 = arith.constant dense<0.000000e+00> : vector<64xf32>
    %109 = vector.multi_reduction <add>, %108, %cst_39 [0] : vector<64x64xf32> to vector<64xf32>
    %110 = vector.shape_cast %109 : vector<64xf32> to vector<1x64xf32>
    %111 = tpu.reciprocal %110 {approx = true} : vector<1x64xf32> -> vector<1x64xf32>
    %112 = arith.mulf %110, %111 : vector<1x64xf32>
    %cst_40 = arith.constant 2.000000e+00 : f32
    %113 = vector.broadcast %cst_40 : f32 to vector<1x64xf32>
    %114 = arith.subf %113, %112 : vector<1x64xf32>
    %115 = arith.mulf %111, %114 : vector<1x64xf32>
    %cst_41 = arith.constant dense<0.000000e+00> : vector<8x64xf32>
    %116 = tpu.matmul %101, %108, %cst_41 {dimension_numbers = #tpu.dot_dimension_numbers<[1], [0], [0], [1], [0, 0, 1, 1], [], []>} : vector<8x64xf32>, vector<64x64xf32>, vector<8x64xf32> -> vector<8x64xf32>
    %117 = vector.broadcast %115 : vector<1x64xf32> to vector<8x64xf32>
    %118 = arith.mulf %116, %117 : vector<8x64xf32>
    %c0_42 = arith.constant 0 : index
    %c64 = arith.constant 64 : index
    %119 = vector.load %arg4[%c0_42, %c64] : memref<32x128xf32, #tpu.memory_space<vmem>>, vector<8x64xf32>
    tpu.vector_store %arg4[%c0_42, %c64], %118 {strides = array<i32>} : memref<32x128xf32, #tpu.memory_space<vmem>>, vector<8x64xf32>,
    %120 = vector.extract_strided_slice %14 {offsets = [8, 64], sizes = [8, 64], strides = [1, 1]} : vector<96x128xf32> to vector<8x64xf32>
    %121 = vector.extract_strided_slice %14 {offsets = [40, 64], sizes = [8, 64], strides = [1, 1]} : vector<96x128xf32> to vector<8x64xf32>
    %122 = vector.extract_strided_slice %14 {offsets = [72, 64], sizes = [8, 64], strides = [1, 1]} : vector<96x128xf32> to vector<8x64xf32>
    %123 = tpu.transpose %121, [1, 0] : vector<8x64xf32> -> vector<64x8xf32>
    %cst_43 = arith.constant dense<0.000000e+00> : vector<64x64xf32>
    %124 = tpu.matmul %123, %120, %cst_43 {dimension_numbers = #tpu.dot_dimension_numbers<[1], [0], [0], [1], [0, 0, 1, 1], [], []>} : vector<64x8xf32>, vector<8x64xf32>, vector<64x64xf32> -> vector<64x64xf32>
    %cst_44 = arith.constant dense<0xFF800000> : vector<64xf32>
    %125 = vector.multi_reduction <maximumf>, %124, %cst_44 [0] : vector<64x64xf32> to vector<64xf32>
    %126 = vector.shape_cast %125 : vector<64xf32> to vector<1x64xf32>
    %127 = vector.broadcast %126 : vector<1x64xf32> to vector<64x64xf32>
    %128 = arith.subf %124, %127 : vector<64x64xf32>
    %129 = math.exp %128 : vector<64x64xf32>
    %cst_45 = arith.constant dense<0.000000e+00> : vector<64xf32>
    %130 = vector.multi_reduction <add>, %129, %cst_45 [0] : vector<64x64xf32> to vector<64xf32>
    %131 = vector.shape_cast %130 : vector<64xf32> to vector<1x64xf32>
    %132 = tpu.reciprocal %131 {approx = true} : vector<1x64xf32> -> vector<1x64xf32>
    %133 = arith.mulf %131, %132 : vector<1x64xf32>
    %cst_46 = arith.constant 2.000000e+00 : f32
    %134 = vector.broadcast %cst_46 : f32 to vector<1x64xf32>
    %135 = arith.subf %134, %133 : vector<1x64xf32>
    %136 = arith.mulf %132, %135 : vector<1x64xf32>
    %cst_47 = arith.constant dense<0.000000e+00> : vector<8x64xf32>
    %137 = tpu.matmul %122, %129, %cst_47 {dimension_numbers = #tpu.dot_dimension_numbers<[1], [0], [0], [1], [0, 0, 1, 1], [], []>} : vector<8x64xf32>, vector<64x64xf32>, vector<8x64xf32> -> vector<8x64xf32>
    %138 = vector.broadcast %136 : vector<1x64xf32> to vector<8x64xf32>
    %139 = arith.mulf %137, %138 : vector<8x64xf32>
    %c8_48 = arith.constant 8 : index
    %c64_49 = arith.constant 64 : index
    %140 = vector.load %arg4[%c8_48, %c64_49] : memref<32x128xf32, #tpu.memory_space<vmem>>, vector<8x64xf32>
    tpu.vector_store %arg4[%c8_48, %c64_49], %139 {strides = array<i32>} : memref<32x128xf32, #tpu.memory_space<vmem>>, vector<8x64xf32>,
    %141 = vector.extract_strided_slice %14 {offsets = [16, 64], sizes = [8, 64], strides = [1, 1]} : vector<96x128xf32> to vector<8x64xf32>
    %142 = vector.extract_strided_slice %14 {offsets = [48, 64], sizes = [8, 64], strides = [1, 1]} : vector<96x128xf32> to vector<8x64xf32>
    %143 = vector.extract_strided_slice %14 {offsets = [80, 64], sizes = [8, 64], strides = [1, 1]} : vector<96x128xf32> to vector<8x64xf32>
    %144 = tpu.transpose %142, [1, 0] : vector<8x64xf32> -> vector<64x8xf32>
    %cst_50 = arith.constant dense<0.000000e+00> : vector<64x64xf32>
    %145 = tpu.matmul %144, %141, %cst_50 {dimension_numbers = #tpu.dot_dimension_numbers<[1], [0], [0], [1], [0, 0, 1, 1], [], []>} : vector<64x8xf32>, vector<8x64xf32>, vector<64x64xf32> -> vector<64x64xf32>
    %cst_51 = arith.constant dense<0xFF800000> : vector<64xf32>
    %146 = vector.multi_reduction <maximumf>, %145, %cst_51 [0] : vector<64x64xf32> to vector<64xf32>
    %147 = vector.shape_cast %146 : vector<64xf32> to vector<1x64xf32>
    %148 = vector.broadcast %147 : vector<1x64xf32> to vector<64x64xf32>
    %149 = arith.subf %145, %148 : vector<64x64xf32>
    %150 = math.exp %149 : vector<64x64xf32>
    %cst_52 = arith.constant dense<0.000000e+00> : vector<64xf32>
    %151 = vector.multi_reduction <add>, %150, %cst_52 [0] : vector<64x64xf32> to vector<64xf32>
    %152 = vector.shape_cast %151 : vector<64xf32> to vector<1x64xf32>
    %153 = tpu.reciprocal %152 {approx = true} : vector<1x64xf32> -> vector<1x64xf32>
    %154 = arith.mulf %152, %153 : vector<1x64xf32>
    %cst_53 = arith.constant 2.000000e+00 : f32
    %155 = vector.broadcast %cst_53 : f32 to vector<1x64xf32>
    %156 = arith.subf %155, %154 : vector<1x64xf32>
    %157 = arith.mulf %153, %156 : vector<1x64xf32>
    %cst_54 = arith.constant dense<0.000000e+00> : vector<8x64xf32>
    %158 = tpu.matmul %143, %150, %cst_54 {dimension_numbers = #tpu.dot_dimension_numbers<[1], [0], [0], [1], [0, 0, 1, 1], [], []>} : vector<8x64xf32>, vector<64x64xf32>, vector<8x64xf32> -> vector<8x64xf32>
    %159 = vector.broadcast %157 : vector<1x64xf32> to vector<8x64xf32>
    %160 = arith.mulf %158, %159 : vector<8x64xf32>
    %c16_55 = arith.constant 16 : index
    %c64_56 = arith.constant 64 : index
    %161 = vector.load %arg4[%c16_55, %c64_56] : memref<32x128xf32, #tpu.memory_space<vmem>>, vector<8x64xf32>
    tpu.vector_store %arg4[%c16_55, %c64_56], %160 {strides = array<i32>} : memref<32x128xf32, #tpu.memory_space<vmem>>, vector<8x64xf32>,
    %162 = vector.extract_strided_slice %14 {offsets = [24, 64], sizes = [8, 64], strides = [1, 1]} : vector<96x128xf32> to vector<8x64xf32>
    %163 = vector.extract_strided_slice %14 {offsets = [56, 64], sizes = [8, 64], strides = [1, 1]} : vector<96x128xf32> to vector<8x64xf32>
    %164 = vector.extract_strided_slice %14 {offsets = [88, 64], sizes = [8, 64], strides = [1, 1]} : vector<96x128xf32> to vector<8x64xf32>
    %165 = tpu.transpose %163, [1, 0] : vector<8x64xf32> -> vector<64x8xf32>
    %cst_57 = arith.constant dense<0.000000e+00> : vector<64x64xf32>
    %166 = tpu.matmul %165, %162, %cst_57 {dimension_numbers = #tpu.dot_dimension_numbers<[1], [0], [0], [1], [0, 0, 1, 1], [], []>} : vector<64x8xf32>, vector<8x64xf32>, vector<64x64xf32> -> vector<64x64xf32>
    %cst_58 = arith.constant dense<0xFF800000> : vector<64xf32>
    %167 = vector.multi_reduction <maximumf>, %166, %cst_58 [0] : vector<64x64xf32> to vector<64xf32>
    %168 = vector.shape_cast %167 : vector<64xf32> to vector<1x64xf32>
    %169 = vector.broadcast %168 : vector<1x64xf32> to vector<64x64xf32>
    %170 = arith.subf %166, %169 : vector<64x64xf32>
    %171 = math.exp %170 : vector<64x64xf32>
    %cst_59 = arith.constant dense<0.000000e+00> : vector<64xf32>
    %172 = vector.multi_reduction <add>, %171, %cst_59 [0] : vector<64x64xf32> to vector<64xf32>
    %173 = vector.shape_cast %172 : vector<64xf32> to vector<1x64xf32>
    %174 = tpu.reciprocal %173 {approx = true} : vector<1x64xf32> -> vector<1x64xf32>
    %175 = arith.mulf %173, %174 : vector<1x64xf32>
    %cst_60 = arith.constant 2.000000e+00 : f32
    %176 = vector.broadcast %cst_60 : f32 to vector<1x64xf32>
    %177 = arith.subf %176, %175 : vector<1x64xf32>
    %178 = arith.mulf %174, %177 : vector<1x64xf32>
    %cst_61 = arith.constant dense<0.000000e+00> : vector<8x64xf32>
    %179 = tpu.matmul %164, %171, %cst_61 {dimension_numbers = #tpu.dot_dimension_numbers<[1], [0], [0], [1], [0, 0, 1, 1], [], []>} : vector<8x64xf32>, vector<64x64xf32>, vector<8x64xf32> -> vector<8x64xf32>
    %180 = vector.broadcast %178 : vector<1x64xf32> to vector<8x64xf32>
    %181 = arith.mulf %179, %180 : vector<8x64xf32>
    %c24_62 = arith.constant 24 : index
    %c64_63 = arith.constant 64 : index
    %182 = vector.load %arg4[%c24_62, %c64_63] : memref<32x128xf32, #tpu.memory_space<vmem>>, vector<8x64xf32>
    tpu.vector_store %arg4[%c24_62, %c64_63], %181 {strides = array<i32>} : memref<32x128xf32, #tpu.memory_space<vmem>>, vector<8x64xf32>,
    %c0_64 = arith.constant 0 : index
    %c0_65 = arith.constant 0 : index
    %183 = vector.load %arg4[%c0_64, %c0_65] : memref<32x128xf32, #tpu.memory_space<vmem>>, vector<32x128xf32>
    %cst_66 = arith.constant dense<0.000000e+00> : vector<32x128xf32>
    %184 = tpu.matmul %2, %183, %cst_66 {dimension_numbers = #tpu.dot_dimension_numbers<[1], [0], [0], [1], [0, 0, 1, 1], [], []>} : vector<32x32xf32>, vector<32x128xf32>, vector<32x128xf32> -> vector<32x128xf32>
    %185 = vector.broadcast %3 : vector<32x1xf32> to vector<32x128xf32>
    %186 = arith.addf %184, %185 : vector<32x128xf32>
    %187 = arith.addf %186, %11 : vector<32x128xf32>
    %c0_67 = arith.constant 0 : index
    %c0_68 = arith.constant 0 : index
    %188 = vector.load %arg3[%c0_67, %c0_68] : memref<32x128xf32, #tpu.memory_space<vmem>>, vector<32x128xf32>
    tpu.vector_store %arg3[%c0_67, %c0_68], %187 {strides = array<i32>} : memref<32x128xf32, #tpu.memory_space<vmem>>, vector<32x128xf32>,
    return
  }
  func.func @transform_0(%arg0: i32) -> (i32, i32) {
    %c0_i32 = arith.constant 0 : i32
    %c0_i32_0 = arith.constant 0 : i32
    %c0_i32_1 = arith.constant 0 : i32
    return %c0_i32, %c0_i32_0 : i32, i32
  }
  func.func @transform_1(%arg0: i32) -> (i32, i32) {
    %c0_i32 = arith.constant 0 : i32
    %c0_i32_0 = arith.constant 0 : i32
    %c0_i32_1 = arith.constant 0 : i32
    return %c0_i32, %c0_i32_0 : i32, i32
  }
  func.func @transform_2(%arg0: i32) -> (i32, i32) {
    %c0_i32 = arith.constant 0 : i32
    %c0_i32_0 = arith.constant 0 : i32
    %c0_i32_1 = arith.constant 0 : i32
    return %c0_i32, %c0_i32_0 : i32, i32
  }
}

</mosaic_0001>

<bundles_post_ra>
// kernel: tpu_custom_call.1
= control target key start
LH: loop header
LB: loop body
LE: loop exit
PB: predicated region body
PF: predicated region fallthrough
CT: control target
= control target key end

     0   :  { %7 = vsyncpa [#allocation4], 0  ;;  %s2771_s0 = inlined_call_operand.hbm [shape: f32[4,128], index: 0, kind: input, shape index: {}]   ;;  %s2772_s1 = inlined_call_operand.hbm [shape: f32[160,128], index: 1, kind: input, shape index: {}]   ;;  %s2773_s2 = inlined_call_operand.hbm [shape: f32[32,128], index: 2, kind: output, shape index: {}]  }
   0x1   :  { %8 = vsyncpa [#allocation7], 0 }
   0x2   :  { %9 = vsyncpa [#allocation5], 0  ;;  %s15_s11 = sshll.u32 %s2771_s0, 4  ;;  %s2276_s12 = smov [#allocation3]   ;;  %s16_s11 = int_to_ptr.hbm [resolvable:$true] %s15_s11 }
   0x3   :  { %s17_s13 = sshll.u32 %s2276_s12, 4  ;;  %s25_s16 = sshll.u32 %s2772_s1, 4  ;;  %s18_s13 = int_to_ptr.vmem [resolvable:$true] %s17_s13  ;;  %s26_s16 = int_to_ptr.hbm [resolvable:$true] %s25_s16 }
   0x4   :  { %20 = dma.hbm_to_vmem [thread:$0]  %s16_s11, 64, %s18_s13, [#allocation4]  }
   0x5   :  { %s2277_s17 = smov [#allocation6]   ;;  %s2278_s19 = smov 128  }
   0x6   :  { %s27_s18 = sshll.u32 %s2277_s17, 4  ;;  %s2279_s20 = smov 8   ;;  %s28_s18 = int_to_ptr.vmem [resolvable:$true] %s27_s18 }
   0x7   :  { %33 = dma.hbm_to_vmem [thread:$0]  %s26_s16, 2560, %s28_s18, [#allocation7], %s2278_s19, %s2278_s19, %s2279_s20  }
   0x8   :  { %2270 = dma.done.wait [#allocation4], 64  }
   0x9   :  { %2271 = vsyncadd [#allocation4], 4294967232 }
   0xa   :  { %2272 = dma.done.wait [#allocation7], 2560  }
   0xb   :  { %2273 = vsyncadd [#allocation7], 4294964736  ;;  %v2280_v0 = vmov 32   ;;  %vm92_vm0 = vcmask 1043456   ;;  %vm83_vm1 = vcmask 31744   ;;  %v59_v2 = vld [vmem:[#allocation6 + $0x88] sm:$0xff] }
   0xc   :  { %2050 = vset.pattern.permute.xlu1 %v2280_v0  ;;  %2049 = vset.pattern.permute.xlu0 %v2280_v0  ;;  %v62_v1 = vld [vmem:[#allocation3] sm:$0xf]  ;;  %v58_v3 = vld [vmem:[#allocation6 + $0x80] sm:$0xff]  ;;  %v60_v5 = vld [vmem:[#allocation6 + $0x90] sm:$0xff]  ;;  %vm189_vm2 = vcmask 261120   ;;  %vm299_vm3 = vcmask 64512  }
   0xd   :  { %2051 = vset.pattern.permute.xlu2 %v2280_v0  ;;  %1947 = vmatpush.msk.msra.mxu0 %vm92_vm0, %v62_v1  ;;  %v61_v4 = vld [vmem:[#allocation6 + $0x98] sm:$0xff]  ;;  %v47_v6 = vld [vmem:[#allocation6 + $0x28] sm:$0xff]  ;;  %v48_v8 = vld [vmem:[#allocation6 + $0x30] sm:$0xff]  ;;  %s2281_s0 = smov 64   ;;  %vm365_vm4 = vcmask 523264   ;;  %vm1241_vm5 = vcmask 1048064  }
   0xe   :  { %70 = vperm.xlu1 %2050, %v59_v2   ;;  %1948 = vmatmul.msk.f32.vlgmr.msra.gmra.mxu0 %vm83_vm1, %v58_v3  ;;  %v43_v7 = vld [vmem:[#allocation6 + $0x8] sm:$0xff]  ;;  %v44_v10 = vld [vmem:[#allocation6 + $0x10] sm:$0xff]  ;;  %v49_v11 = vld [vmem:[#allocation6 + $0x38] sm:$0xff]  ;;  %s2282_s1 = smov [#allocation8]   ;;  %s1933_s24 = sshll.u32 %s2773_s2, 4  ;;  %s1934_s24 = int_to_ptr.hbm [resolvable:$true] %s1933_s24 }
   0xf   :  { %80 = vperm.xlu0 %2049, %v61_v4   ;;  %v51_v9 = vld [vmem:[#allocation6 + $0x48] sm:$0xff]  ;;  %v45_v12 = vld [vmem:[#allocation6 + $0x18] sm:$0xff]  ;;  %v46_v25 = vld [vmem:[#allocation6 + $0x20] sm:$0xff]  ;;  %s1931_s21 = sshll.u32 %s2282_s1, 4  ;;  %s1932_s21 = int_to_ptr.vmem [resolvable:$true] %s1931_s21 }
  0x10   :  { %151 = vperm.xlu2 %2051, %v46_v25   ;;  %v42_v30 = vld [vmem:[#allocation6] sm:$0xff]  ;;  %v52_v52 = vld [vmem:[#allocation6 + $0x50] sm:$0xff]  ;;  %v53_v53 = vld [vmem:[#allocation6 + $0x58] sm:$0xff] }
  0x11   :  { %v50_v31 = vld [vmem:[#allocation6 + $0x40] sm:$0xff] }
  0x16   :  { %65 = vperm.xlu1 %2050, %v58_v3   ;;  %1949 = vmatmul.msk.f32.gmra.mxu0 %vm83_vm1, %v59_v2 }
  0x17   :  { %75 = vperm.xlu0 %2049, %v60_v5  }
  0x18   :  { %131 = vperm.xlu2 %2051, %v42_v30  }
  0x1e   :  { %156 = vperm.xlu1 %2050, %v47_v6   ;;  %1950 = vmatmul.msk.f32.gmra.mxu0 %vm83_vm1, %v60_v5 }
  0x20   :  { %171 = vperm.xlu2 %2051, %v50_v31  }
  0x26   :  { %136 = vperm.xlu1 %2050, %v43_v7   ;;  %1951 = vmatmul.msk.f32.gmra.mxu0 %vm83_vm1, %v61_v4 }
  0x2e   :  { %161 = vperm.xlu1 %2050, %v48_v8  }
  0x36   :  { %176 = vperm.xlu1 %2050, %v51_v9  }
  0x3e   :  { %141 = vperm.xlu1 %2050, %v44_v10  }
  0x46   :  { %166 = vperm.xlu1 %2050, %v49_v11  }
  0x4e   :  { %146 = vperm.xlu1 %2050, %v45_v12  }
  0x6a   :  { %v152_v32 = vpop.permute.xlu2 %151 }
  0x72   :  { %v132_v33 = vpop.permute.xlu2 %131 }
  0x7a   :  { %v172_v56 = vpop.permute.xlu2 %171 }
  0x80   :  { %v71_v17 = vpop.permute.xlu1 %70 }
  0x81   :  { %v81_v15 = vpop.permute.xlu0 %80 }
  0x88   :  { %v66_v24 = vpop.permute.xlu1 %65 }
  0x89   :  { %v76_v18 = vpop.permute.xlu0 %75 }
  0x8b   :  { %v113_v13 = vpop.f32.mrf.mxu0 }
  0x8c   :  { %v2318_v26 = vadd.f32 %v113_v13, %v66_v24 }
  0x8e   :  { %2785 = vst [vmem:[#allocation15_spill] sm:$0xff] %v2318_v26  ;;  %v2777_v29 = vmax.f32 %v2318_v26, 0.0 }
  0x90   :  { %v157_v36 = vpop.permute.xlu1 %156 }
  0x93   :  { %v116_v14 = vpop.f32.mrf.mxu0 }
  0x94   :  { %v2315_v22 = vadd.f32 %v116_v14, %v71_v17 }
  0x96   :  { %2784 = vst [vmem:[#allocation14_spill] sm:$0xff] %v2315_v22  ;;  %v2776_v28 = vmax.f32 %v2315_v22, 0.0 }
  0x98   :  { %v137_v38 = vpop.permute.xlu1 %136 }
  0x9b   :  { %v119_v16 = vpop.f32.mrf.mxu0 }
  0x9c   :  { %v2311_v20 = vadd.f32 %v119_v16, %v76_v18 }
  0x9e   :  { %2782 = vst [vmem:[#allocation12_spill] sm:$0xff] %v2311_v20  ;;  %v2775_v27 = vmax.f32 %v2311_v20, 0.0 }
  0xa0   :  { %v162_v41 = vpop.permute.xlu1 %161 }
  0xa3   :  { %v122_v19 = vpop.f32.mrf.mxu0 }
  0xa4   :  { %v2313_v21 = vadd.f32 %v122_v19, %v81_v15 }
  0xa6   :  { %2783 = vst [vmem:[#allocation13_spill] sm:$0xff] %v2313_v21  ;;  %v2774_v23 = vmax.f32 %v2313_v21, 0.0 }
  0xa8   :  { %226 = vmatpush.msra.mxu1 %v2774_v23  ;;  %v177_v44 = vpop.permute.xlu1 %176 }
  0xaa   :  { %227 = vmatpush.msra.mxu1 %v2775_v27 }
  0xac   :  { %228 = vmatpush.msra.mxu1 %v2776_v28 }
  0xae   :  { %229 = vmatpush.msra.mxu1 %v2777_v29 }
  0xaf   :  { %1952 = vmatmul.msk.f32.vlgmr.msra.gmra.mxu1 %vm189_vm2, %v42_v30 }
  0xb0   :  { %v142_v47 = vpop.permute.xlu1 %141 }
  0xb7   :  { %1953 = vmatmul.msk.f32.gmra.mxu1 %vm189_vm2, %v43_v7 }
  0xb8   :  { %v167_v49 = vpop.permute.xlu1 %166 }
  0xbf   :  { %1954 = vmatmul.msk.f32.gmra.mxu1 %vm189_vm2, %v44_v10 }
  0xc0   :  { %v2367_v63 = vpop.permute.xlu1 %146 }
  0xc7   :  { %1955 = vmatmul.msk.f32.gmra.mxu1 %vm189_vm2, %v45_v12 }
  0xcf   :  { %1956 = vmatmul.msk.f32.gmra.mxu1 %vm189_vm2, %v46_v25 }
  0xd7   :  { %1957 = vmatmul.msk.f32.gmra.mxu1 %vm189_vm2, %v47_v6 }
  0xdf   :  { %1958 = vmatmul.msk.f32.gmra.mxu1 %vm189_vm2, %v48_v8 }
  0xe7   :  { %1959 = vmatmul.msk.f32.gmra.mxu1 %vm189_vm2, %v49_v11 }
  0xef   :  { %1960 = vmatmul.msk.f32.gmra.mxu1 %vm189_vm2, %v50_v31 }
  0xf7   :  { %1961 = vmatmul.msk.f32.gmra.mxu1 %vm189_vm2, %v51_v9 }
  0xff   :  { %1962 = vmatmul.msk.f32.gmra.mxu1 %vm189_vm2, %v52_v52 }
 0x107   :  { %1963 = vmatmul.msk.f32.gmra.mxu1 %vm189_vm2, %v53_v53 }
 0x12c   :  { %v231_v34 = vpop.f32.mrf.mxu1 }
 0x12d   :  { %v232_v35 = vadd.f32 %v231_v34, %v132_v33 }
 0x12f   :  { %339 = vmatpush.msrb.mxu0 %v232_v35  ;;  %2040 = vmatpush.msra.mxu2 %v232_v35 }
 0x134   :  { %v234_v37 = vpop.f32.mrf.mxu1 }
 0x135   :  { %v2363_v62 = vadd.f32 %v234_v37, %v137_v38 }
 0x13c   :  { %v2341_v39 = vpop.f32.mrf.mxu1 }
 0x13d   :  { %v2405_v19 = vadd.f32 %v2341_v39, %v142_v47 }
 0x144   :  { %v2343_v40 = vpop.f32.mrf.mxu1 }
 0x14c   :  { %v243_v42 = vpop.f32.mrf.mxu1 }
 0x14d   :  { %v244_v43 = vadd.f32 %v243_v42, %v152_v32 }
 0x14f   :  { %267 = vxpose.xlu0.b32.start.end [1/1] (short) (narrow) %v244_v43, 64 }
 0x154   :  { %v246_v45 = vpop.f32.mrf.mxu1 }
 0x155   :  { %v247_v46 = vadd.f32 %v246_v45, %v157_v36 }
 0x157   :  { %461 = vxpose.xlu2.b32.start.end [1/1] (short) (narrow) %v247_v46, 64 }
 0x15c   :  { %v249_v48 = vpop.f32.mrf.mxu1 }
 0x15d   :  { %v2350_v54 = vadd.f32 %v249_v48, %v162_v41 }
 0x164   :  { %v252_v50 = vpop.f32.mrf.mxu1 }
 0x165   :  { %v2345_v51 = vadd.f32 %v252_v50, %v167_v49 }
 0x167   :  { %845 = vxpose.xlu1.b32.start.end [1/1] (short) (narrow) %v2345_v51, 64 }
 0x16c   :  { %v255_v11 = vpop.f32.mrf.mxu1 }
 0x16d   :  { %v2390_v13 = vadd.f32 %v255_v11, %v172_v56 }
 0x174   :  { %v258_v15 = vpop.f32.mrf.mxu1 }
 0x175   :  { %v2396_v16 = vadd.f32 %v258_v15, %v177_v44 }
 0x17c   :  { %v261_v25 = vpop.f32.mrf.mxu1 }
 0x18f   :  { %653 = vxpose.xlu0.b32.start.end [1/1] (short) (narrow) %v2350_v54, 64 }
 0x1f0   :  { %v2357_v58 = vpop.trf.xlu2 }
 0x1f3   :  { %v283_v55 = vpop.trf.xlu0 }
 0x1f4   :  { %1964 = vmatmul.msk.f32.vlgmr.msrb.gmra.mxu0 %vm299_vm3, %v283_v55 }
 0x1f8   :  { %181 = vperm.xlu2 %2051, %v52_v52   ;;  %v2361_v61 = vpop.trf.xlu2 }
 0x1f9   :  { %1244 = vrot.lane.b32.xlu1 %v247_v46, %s2281_s0 }
 0x1fb   :  { %v284_v57 = vpop.trf.xlu0 }
 0x1fc   :  { %1965 = vmatmul.msk.f32.gmra.mxu0 %vm299_vm3, %v284_v57 }
 0x200   :  { %1074 = vrot.lane.b32.xlu2 %v232_v35, %s2281_s0  ;;  %v2370_v1 = vpop.trf.xlu2 }
 0x203   :  { %v285_v59 = vpop.trf.xlu0 }
 0x204   :  { %1966 = vmatmul.msk.f32.vlgmr.msra.gmra.mxu2 %vm299_vm3, %v285_v59 }
 0x208   :  { %186 = vperm.xlu2 %2051, %v53_v53   ;;  %v2375_v4 = vpop.trf.xlu2 }
 0x20b   :  { %v286_v60 = vpop.trf.xlu0  ;;  %v2372_v3 = vpop.trf.xlu1 }
 0x20c   :  { %1967 = vmatmul.msk.f32.gmra.mxu2 %vm299_vm3, %v286_v60 }
 0x210   :  { %1280 = vrot.lane.b32.xlu2 %v2363_v62, %s2281_s0  ;;  %v2380_v7 = vpop.trf.xlu2 }
 0x213   :  { %v287_v0 = vpop.trf.xlu0  ;;  %v2378_v6 = vpop.trf.xlu1 }
 0x214   :  { %1968 = vmatmul.msk.f32.gmra.mxu2 %vm299_vm3, %v287_v0 }
 0x218   :  { %v2385_v10 = vpop.trf.xlu2 }
 0x21b   :  { %v288_v2 = vpop.trf.xlu0  ;;  %v2383_v9 = vpop.trf.xlu1 }
 0x21c   :  { %1969 = vmatmul.msk.f32.gmra.mxu2 %vm299_vm3, %v288_v2 }
 0x220   :  { %v2394_v14 = vpop.trf.xlu2 }
 0x223   :  { %v289_v5 = vpop.trf.xlu0  ;;  %v2388_v12 = vpop.trf.xlu1 }
 0x224   :  { %1970 = vmatmul.msk.f32.gmra.mxu2 %vm299_vm3, %v289_v5 }
 0x228   :  { %v2402_v18 = vpop.trf.xlu2 }
 0x22b   :  { %v290_v8 = vpop.trf.xlu0  ;;  %v2398_v17 = vpop.trf.xlu1 }
 0x22c   :  { %1971 = vmatmul.msk.f32.gmra.mxu2 %vm299_vm3, %v290_v8  ;;  %2786 = vst [vmem:[#allocation16_spill] sm:$0xff] %v2398_v17 }
 0x233   :  { %v2409_v24 = vpop.trf.xlu1  ;;  %v2415_v33 = vpop.trf.xlu0 }
 0x234   :  { %2787 = vst [vmem:[#allocation17_spill] sm:$0xff] %v2409_v24 }
 0x235   :  { %1038 = vrot.lane.b32.xlu0 %v244_v43, %s2281_s0 }
 0x23b   :  { %v2413_v32 = vpop.trf.xlu1  ;;  %v2419_v35 = vpop.trf.xlu0 }
 0x23c   :  { %2788 = vst [vmem:[#allocation18_spill] sm:$0xff] %v2413_v32 }
 0x23d   :  { %1212 = vrot.lane.b32.xlu0 %v2390_v13, %s2281_s0 }
 0x243   :  { %v2417_v34 = vpop.trf.xlu1  ;;  %v2421_v37 = vpop.trf.xlu0 }
 0x244   :  { %2789 = vst [vmem:[#allocation19_spill] sm:$0xff] %v2417_v34 }
 0x245   :  { %1418 = vrot.lane.b32.xlu0 %v2396_v16, %s2281_s0 }
 0x24b   :  { %v2423_v38 = vpop.trf.xlu0 }
 0x24d   :  { %1485 = vrot.lane.b32.xlu0 %v2405_v19, %s2281_s0 }
 0x252   :  { %v182_v30 = vpop.permute.xlu2 %181 }
 0x253   :  { %v2411_v31 = vadd.f32 %v261_v25, %v182_v30  ;;  %v2425_v39 = vpop.trf.xlu0 }
 0x25b   :  { %v2427_v42 = vpop.trf.xlu0 }
 0x263   :  { %v2429_v44 = vpop.trf.xlu0 }
 0x26b   :  { %v1245_v36 = vpop.permute.xlu1 %1244  ;;  %v2431_v46 = vpop.trf.xlu0 }
 0x26c   :  { %1247 = vxpose.xlu1.b32.start.end [1/1] (short) (narrow) %v1245_v36, 64 }
 0x271   :  { %v341_v48 = vpop.f32.mrf.mxu0 }
 0x272   :  { %v366_v0 = vsel %vm365_vm4, %v341_v48, -inf }
 0x279   :  { %v344_v52 = vpop.f32.mrf.mxu0 }
 0x27a   :  { %v367_v55 = vsel %vm365_vm4, %v344_v52, -inf }
 0x287   :  { %v347_v41 = vpop.f32.mrf.mxu2 }
 0x288   :  { %v368_v2 = vsel %vm365_vm4, %v347_v41, -inf }
 0x28f   :  { %v350_v43 = vpop.f32.mrf.mxu2 }
 0x290   :  { %v369_v5 = vsel %vm365_vm4, %v350_v43, -inf }
 0x297   :  { %v353_v45 = vpop.f32.mrf.mxu2 }
 0x298   :  { %v370_v56 = vsel %vm365_vm4, %v353_v45, -inf }
 0x299   :  { %v371_v11 = vmax.f32 %v366_v0, %v370_v56 }
 0x29f   :  { %v356_v47 = vpop.f32.mrf.mxu2 }
 0x2a0   :  { %v372_v53 = vsel %vm365_vm4, %v356_v47, -inf }
 0x2a1   :  { %v373_v59 = vmax.f32 %v367_v55, %v372_v53 }
 0x2a3   :  { %v378_v30 = vmax.f32 %v371_v11, %v373_v59 }
 0x2a7   :  { %v1039_v49 = vpop.permute.xlu0 %1038  ;;  %v359_v50 = vpop.f32.mrf.mxu2 }
 0x2a8   :  { %1041 = vxpose.xlu2.b32.start.end [1/1] (short) (narrow) %v1039_v49, 64  ;;  %v374_v57 = vsel %vm365_vm4, %v359_v50, -inf }
 0x2a9   :  { %v375_v15 = vmax.f32 %v368_v2, %v374_v57 }
 0x2af   :  { %v362_v60 = vpop.f32.mrf.mxu2 }
 0x2b0   :  { %v376_v8 = vsel %vm365_vm4, %v362_v60, -inf }
 0x2b1   :  { %v377_v25 = vmax.f32 %v369_v5, %v376_v8  ;;  %v1075_v8 = vpop.permute.xlu2 %1074 }
 0x2b3   :  { %v379_v36 = vmax.f32 %v375_v15, %v377_v25 }
 0x2b5   :  { %v380_v49 = vmax.f32 %v378_v30, %v379_v36 }
 0x2b7   :  { %v381_v23 = vrot.slane %v380_v49, 4 }
 0x2b9   :  { %v382_v27 = vmax.f32 %v380_v49, %v381_v23 }
 0x2bb   :  { %v383_v28 = vrot.slane %v382_v27, 2 }
 0x2bd   :  { %v384_v29 = vmax.f32 %v382_v27, %v383_v28 }
 0x2bf   :  { %v385_v53 = vrot.slane %v384_v29, 1 }
 0x2c1   :  { %v386_v55 = vmax.f32 %v384_v29, %v385_v53 }
 0x2c3   :  { %v394_v21 = vsub.f32 %v362_v60, %v386_v55  ;;  %v393_v20 = vsub.f32 %v359_v50, %v386_v55  ;;  %v392_v22 = vsub.f32 %v356_v47, %v386_v55  ;;  %v391_v26 = vsub.f32 %v353_v45, %v386_v55 }
 0x2c4   :  { %v389_v34 = vsub.f32 %v347_v41, %v386_v55  ;;  %v388_v17 = vsub.f32 %v344_v52, %v386_v55  ;;  %v387_v57 = vsub.f32 %v341_v48, %v386_v55  ;;  %v390_v0 = vsub.f32 %v350_v43, %v386_v55 }
 0x2c5   :  { %v409_v32 = vmul.f32 1.442695, %v394_v21  ;;  %v407_v24 = vmul.f32 1.442695, %v393_v20  ;;  %v405_v56 = vmul.f32 1.442695, %v392_v22 }
 0x2c6   :  { %v403_v59 = vmul.f32 1.442695, %v391_v26  ;;  %v399_v2 = vmul.f32 1.442695, %v389_v34  ;;  %v397_v23 = vmul.f32 1.442695, %v388_v17 }
 0x2c7   :  { %2052 = vpow2.f32 %v409_v32  ;;  %v395_v27 = vmul.f32 1.442695, %v387_v57  ;;  %v401_v28 = vmul.f32 1.442695, %v390_v0  ;;  %v2492_v0 = vadd.f32 %v2343_v40, %v2367_v63 }
 0x2c8   :  { %2054 = vpow2.f32 %v407_v24 }
 0x2c9   :  { %2056 = vpow2.f32 %v405_v56 }
 0x2ca   :  { %2058 = vpow2.f32 %v403_v59 }
 0x2cb   :  { %2060 = vpow2.f32 %v399_v2 }
 0x2cc   :  { %2062 = vpow2.f32 %v397_v23 }
 0x2cd   :  { %v2053_v29 = vpop.eup %2052  ;;  %2064 = vpow2.f32 %v395_v27 }
 0x2ce   :  { %447 = vmatpush.msra.mxu3 %v2053_v29  ;;  %v2055_v21 = vpop.eup %2054  ;;  %2066 = vpow2.f32 %v401_v28  ;;  %v424_v30 = vsel %vm365_vm4, %v2053_v29, 0.0 }
 0x2cf   :  { %v2057_v20 = vpop.eup %2056  ;;  %v422_v15 = vsel %vm365_vm4, %v2055_v21, 0.0 }
 0x2d0   :  { %448 = vmatpush.msra.mxu3 %v2055_v21  ;;  %v2059_v22 = vpop.eup %2058  ;;  %v420_v5 = vsel %vm365_vm4, %v2057_v20, 0.0 }
 0x2d1   :  { %v2061_v32 = vpop.eup %2060  ;;  %v418_v52 = vsel %vm365_vm4, %v2059_v22, 0.0 }
 0x2d2   :  { %449 = vmatpush.msra.mxu3 %v2057_v20  ;;  %v2063_v26 = vpop.eup %2062  ;;  %v414_v45 = vsel %vm365_vm4, %v2061_v32, 0.0 }
 0x2d3   :  { %v2065_v34 = vpop.eup %2064  ;;  %v412_v17 = vsel %vm365_vm4, %v2063_v26, 0.0 }
 0x2d4   :  { %450 = vmatpush.msra.mxu3 %v2059_v22  ;;  %v2067_v24 = vpop.eup %2066  ;;  %v411_v41 = vsel %vm365_vm4, %v2065_v34, 0.0 }
 0x2d5   :  { %v413_v43 = vadd.f32 %v412_v17, %v411_v41  ;;  %v416_v48 = vsel %vm365_vm4, %v2067_v24, 0.0 }
 0x2d6   :  { %451 = vmatpush.msra.mxu3 %v2067_v24 }
 0x2d7   :  { %v415_v47 = vadd.f32 %v414_v45, %v413_v43 }
 0x2d8   :  { %452 = vmatpush.msra.mxu3 %v2061_v32 }
 0x2d9   :  { %v417_v50 = vadd.f32 %v416_v48, %v415_v47 }
 0x2da   :  { %453 = vmatpush.msra.mxu3 %v2063_v26 }
 0x2db   :  { %v419_v60 = vadd.f32 %v418_v52, %v417_v50 }
 0x2dc   :  { %454 = vmatpush.msra.mxu3 %v2065_v34 }
 0x2dd   :  { %1972 = vmatmul.msk.f32.vlgmr.msra.gmra.mxu3 %vm365_vm4, %v2390_v13  ;;  %v421_v11 = vadd.f32 %v420_v5, %v419_v60  ;;  %v187_v13 = vpop.permute.xlu2 %186 }
 0x2de   :  { %532 = vmatpush.msrb.mxu3 %v2363_v62  ;;  %v264_v62 = vpop.f32.mrf.mxu1 }
 0x2df   :  { %v423_v25 = vadd.f32 %v422_v15, %v421_v11  ;;  %v2462_v49 = vadd.f32 %v264_v62, %v187_v13 }
 0x2e0   :  { %1116 = vmatpush.msra.mxu3 %v1075_v8 }
 0x2e1   :  { %v425_v36 = vadd.f32 %v424_v30, %v423_v25 }
 0x2e5   :  { %1973 = vmatmul.msk.f32.vlgmr.msrb.gmra.mxu3 %vm299_vm3, %v2357_v58 }
 0x2ed   :  { %1974 = vmatmul.msk.f32.gmra.mxu3 %vm299_vm3, %v2361_v61  ;;  %v426_v61 = vrot.slane %v425_v36, 4 }
 0x2f5   :  { %1975 = vmatmul.msk.f32.gmra.mxu3 %vm299_vm3, %v2370_v1  ;;  %v2478_v1 = vpop.permute.xlu2 %1280 }
 0x2fd   :  { %1976 = vmatmul.msk.f32.gmra.mxu3 %vm299_vm3, %v2375_v4 }
 0x2fe   :  { %1654 = vrot.lane.b32.xlu1 %v2345_v51, %s2281_s0 }
 0x305   :  { %1977 = vmatmul.msk.f32.gmra.mxu3 %vm299_vm3, %v2380_v7  ;;  %v427_v7 = vadd.f32 %v426_v61, %v425_v36 }
 0x306   :  { %1828 = vrot.lane.b32.xlu1 %v2462_v49, %s2281_s0 }
 0x307   :  { %v428_v53 = vrot.slane %v427_v7, 2 }
 0x30d   :  { %1978 = vmatmul.msk.f32.gmra.mxu3 %vm299_vm3, %v2385_v10  ;;  %v429_v10 = vadd.f32 %v428_v53, %v427_v7 }
 0x310   :  { %v2474_v51 = vpop.trf.xlu1 }
 0x315   :  { %1979 = vmatmul.msk.f32.gmra.mxu3 %vm299_vm3, %v2394_v14  ;;  %v430_v14 = vrot.slane %v429_v10, 1 }
 0x317   :  { %v431_v57 = vadd.f32 %v430_v14, %v429_v10 }
 0x318   :  { %v2476_v58 = vpop.trf.xlu1 }
 0x319   :  { %2068 = vrcp.f32 %v431_v57 }
 0x31d   :  { %1980 = vmatmul.msk.f32.gmra.mxu3 %vm299_vm3, %v2402_v18 }
 0x31f   :  { %v2069_v23 = vpop.eup %2068 }
 0x320   :  { %v2480_v4 = vpop.trf.xlu1  ;;  %v433_v27 = vmul.f32 %v2069_v23, %v431_v57 }
 0x322   :  { %v434_v29 = vsub.f32 2.0, %v433_v27 }
 0x324   :  { %v435_v21 = vmul.f32 %v2069_v23, %v434_v29 }
 0x328   :  { %v2483_v56 = vpop.trf.xlu1 }
 0x330   :  { %v2488_v59 = vpop.trf.xlu1 }
 0x341   :  { %v1057_v55 = vpop.trf.xlu2 }
 0x342   :  { %2000 = vmatmul.msk.f32.vlgmr.msra.gmra.mxu3 %vm299_vm3, %v1057_v55 }
 0x349   :  { %1449 = vrot.lane.b32.xlu2 %v2350_v54, %s2281_s0  ;;  %v1058_v18 = vpop.trf.xlu2  ;;  %v2497_v54 = vpop.trf.xlu1 }
 0x34a   :  { %2001 = vmatmul.msk.f32.gmra.mxu3 %vm299_vm3, %v1058_v18 }
 0x351   :  { %1690 = vrot.lane.b32.xlu2 %v2492_v0, %s2281_s0  ;;  %v1059_v2 = vpop.trf.xlu2  ;;  %v2500_v40 = vpop.trf.xlu1 }
 0x352   :  { %2002 = vmatmul.msk.f32.gmra.mxu3 %vm299_vm3, %v1059_v2 }
 0x359   :  { %v1060_v28 = vpop.trf.xlu2  ;;  %v2505_v34 = vpop.trf.xlu1 }
 0x35a   :  { %2003 = vmatmul.msk.f32.gmra.mxu3 %vm299_vm3, %v1060_v28 }
 0x360   :  { %v456_v20 = vpop.f32.mrf.mxu3 }
 0x361   :  { %v459_v22 = vmul.f32 %v456_v20, %v435_v21  ;;  %v1061_v32 = vpop.trf.xlu2 }
 0x362   :  { %2004 = vmatmul.msk.f32.gmra.mxu3 %vm299_vm3, %v1061_v32 }
 0x363   :  { %460 = vst.msk [vmem:[#allocation2] sm:$0xff] %vm365_vm4, %v459_v22 }
 0x368   :  { %v534_v63 = vpop.f32.mrf.mxu3 }
 0x369   :  { %v1062_v26 = vpop.trf.xlu2  ;;  %v558_v30 = vsel %vm365_vm4, %v534_v63, -inf }
 0x36a   :  { %2005 = vmatmul.msk.f32.gmra.mxu3 %vm299_vm3, %v1062_v26 }
 0x370   :  { %v537_v17 = vpop.f32.mrf.mxu3  ;;  %v1655_v41 = vpop.permute.xlu1 %1654 }
 0x371   :  { %v1063_v24 = vpop.trf.xlu2  ;;  %v559_v5 = vsel %vm365_vm4, %v537_v17, -inf }
 0x372   :  { %2006 = vmatmul.msk.f32.gmra.mxu3 %vm299_vm3, %v1063_v24 }
 0x377   :  { %1657 = vxpose.xlu2.b32.start.end [1/1] (short) (narrow) %v1655_v41, 64 }
 0x378   :  { %v540_v43 = vpop.f32.mrf.mxu3 }
 0x379   :  { %v1064_v45 = vpop.trf.xlu2  ;;  %v560_v36 = vsel %vm365_vm4, %v540_v43, -inf }
 0x37a   :  { %2007 = vmatmul.msk.f32.gmra.mxu3 %vm299_vm3, %v1064_v45 }
 0x380   :  { %v543_v47 = vpop.f32.mrf.mxu3 }
 0x381   :  { %v561_v62 = vsel %vm365_vm4, %v543_v47, -inf }
 0x388   :  { %v546_v48 = vpop.f32.mrf.mxu3 }
 0x389   :  { %v562_v8 = vsel %vm365_vm4, %v546_v48, -inf }
 0x38a   :  { %v563_v61 = vmax.f32 %v558_v30, %v562_v8 }
 0x390   :  { %v549_v50 = vpop.f32.mrf.mxu3 }
 0x391   :  { %v564_v60 = vsel %vm365_vm4, %v549_v50, -inf }
 0x392   :  { %v565_v15 = vmax.f32 %v559_v5, %v564_v60 }
 0x394   :  { %v570_v10 = vmax.f32 %v563_v61, %v565_v15 }
 0x398   :  { %v552_v52 = vpop.f32.mrf.mxu3 }
 0x399   :  { %v566_v11 = vsel %vm365_vm4, %v552_v52, -inf }
 0x39a   :  { %v567_v7 = vmax.f32 %v560_v36, %v566_v11 }
 0x3a0   :  { %v555_v25 = vpop.f32.mrf.mxu3 }
 0x3a1   :  { %v568_v13 = vsel %vm365_vm4, %v555_v25, -inf }
 0x3a2   :  { %v569_v53 = vmax.f32 %v561_v62, %v568_v13 }
 0x3a3   :  { %v1450_v55 = vpop.permute.xlu2 %1449 }
 0x3a4   :  { %v571_v14 = vmax.f32 %v567_v7, %v569_v53  ;;  %1452 = vxpose.xlu0.b32.start.end [1/1] (short) (narrow) %v1450_v55, 64 }
 0x3a6   :  { %v572_v18 = vmax.f32 %v570_v10, %v571_v14 }
 0x3a8   :  { %v573_v57 = vrot.slane %v572_v18, 4 }
 0x3aa   :  { %v574_v2 = vmax.f32 %v572_v18, %v573_v57 }
 0x3ac   :  { %v575_v23 = vrot.slane %v574_v2, 2 }
 0x3ae   :  { %v576_v27 = vmax.f32 %v574_v2, %v575_v23 }
 0x3b0   :  { %v577_v28 = vrot.slane %v576_v27, 1 }
 0x3b2   :  { %v578_v29 = vmax.f32 %v576_v27, %v577_v28 }
 0x3b4   :  { %v579_v21 = vsub.f32 %v534_v63, %v578_v29  ;;  %v580_v20 = vsub.f32 %v537_v17, %v578_v29  ;;  %v581_v22 = vsub.f32 %v540_v43, %v578_v29  ;;  %v582_v32 = vsub.f32 %v543_v47, %v578_v29 }
 0x3b5   :  { %v583_v26 = vsub.f32 %v546_v48, %v578_v29  ;;  %v584_v24 = vsub.f32 %v549_v50, %v578_v29  ;;  %v586_v5 = vsub.f32 %v555_v25, %v578_v29  ;;  %v585_v11 = vsub.f32 %v552_v52, %v578_v29 }
 0x3b6   :  { %v587_v41 = vmul.f32 1.442695, %v579_v21  ;;  %v589_v45 = vmul.f32 1.442695, %v580_v20  ;;  %v591_v60 = vmul.f32 1.442695, %v581_v22 }
 0x3b7   :  { %v593_v8 = vmul.f32 1.442695, %v582_v32  ;;  %v595_v15 = vmul.f32 1.442695, %v583_v26  ;;  %v597_v30 = vmul.f32 1.442695, %v584_v24 }
 0x3b8   :  { %2070 = vpow2.f32 %v587_v41  ;;  %v601_v36 = vmul.f32 1.442695, %v586_v5  ;;  %v599_v63 = vmul.f32 1.442695, %v585_v11 }
 0x3b9   :  { %2072 = vpow2.f32 %v589_v45 }
 0x3ba   :  { %2074 = vpow2.f32 %v591_v60 }
 0x3bb   :  { %2076 = vpow2.f32 %v593_v8 }
 0x3bc   :  { %2078 = vpow2.f32 %v595_v15 }
 0x3bd   :  { %2080 = vpow2.f32 %v597_v30 }
 0x3be   :  { %v2071_v17 = vpop.eup %2070  ;;  %2082 = vpow2.f32 %v601_v36 }
 0x3bf   :  { %v2073_v43 = vpop.eup %2072  ;;  %v603_v47 = vsel %vm365_vm4, %v2071_v17, 0.0  ;;  %2084 = vpow2.f32 %v599_v63 }
 0x3c0   :  { %v2075_v48 = vpop.eup %2074  ;;  %v604_v50 = vsel %vm365_vm4, %v2073_v43, 0.0 }
 0x3c1   :  { %v2077_v25 = vpop.eup %2076  ;;  %v605_v52 = vadd.f32 %v604_v50, %v603_v47  ;;  %v606_v62 = vsel %vm365_vm4, %v2075_v48, 0.0 }
 0x3c2   :  { %v2079_v13 = vpop.eup %2078  ;;  %v608_v53 = vsel %vm365_vm4, %v2077_v25, 0.0 }
 0x3c3   :  { %v607_v61 = vadd.f32 %v606_v62, %v605_v52  ;;  %v2081_v7 = vpop.eup %2080  ;;  %v610_v18 = vsel %vm365_vm4, %v2079_v13, 0.0 }
 0x3c4   :  { %v2083_v55 = vpop.eup %2082  ;;  %v612_v23 = vsel %vm365_vm4, %v2081_v7, 0.0 }
 0x3c5   :  { %v609_v10 = vadd.f32 %v608_v53, %v607_v61  ;;  %v2521_v14 = vpop.f32.mrf.mxu3  ;;  %639 = vmatpush.msra.mxu0 %v2083_v55  ;;  %v2085_v57 = vpop.eup %2084  ;;  %v616_v21 = vsel %vm365_vm4, %v2083_v55, 0.0 }
 0x3c6   :  { %v614_v28 = vsel %vm365_vm4, %v2085_v57, 0.0 }
 0x3c7   :  { %v611_v2 = vadd.f32 %v610_v18, %v609_v10  ;;  %640 = vmatpush.msra.mxu0 %v2085_v57 }
 0x3c9   :  { %v613_v27 = vadd.f32 %v612_v23, %v611_v2  ;;  %641 = vmatpush.msra.mxu0 %v2081_v7 }
 0x3cb   :  { %v615_v29 = vadd.f32 %v614_v28, %v613_v27  ;;  %642 = vmatpush.msra.mxu0 %v2079_v13 }
 0x3cd   :  { %v2527_v20 = vadd.f32 %v616_v21, %v615_v29  ;;  %v1121_v22 = vpop.f32.mrf.mxu3  ;;  %643 = vmatpush.msra.mxu0 %v2077_v25 }
 0x3cf   :  { %644 = vmatpush.msra.mxu0 %v2075_v48 }
 0x3d1   :  { %645 = vmatpush.msra.mxu0 %v2073_v43 }
 0x3d3   :  { %646 = vmatpush.msra.mxu0 %v2071_v17 }
 0x3d4   :  { %1981 = vmatmul.msk.f32.vlgmr.msra.gmra.mxu0 %vm365_vm4, %v2396_v16  ;;  %v1142_v16 = vsel %vm365_vm4, %v2521_v14, -inf }
 0x3d5   :  { %v1124_v32 = vpop.f32.mrf.mxu3  ;;  %724 = vmatpush.msrb.mxu0 %v2405_v19  ;;  %v1143_v19 = vsel %vm365_vm4, %v1121_v22, -inf }
 0x3dc   :  { %1982 = vmatmul.msk.f32.vlgmr.msrb.gmra.mxu0 %vm299_vm3, %v2415_v33 }
 0x3dd   :  { %v1127_v26 = vpop.f32.mrf.mxu3 }
 0x3de   :  { %v1145_v11 = vsel %vm365_vm4, %v1127_v26, -inf }
 0x3e4   :  { %1983 = vmatmul.msk.f32.gmra.mxu0 %vm299_vm3, %v2419_v35  ;;  %v1144_v35 = vsel %vm365_vm4, %v1124_v32, -inf }
 0x3e5   :  { %v1130_v24 = vpop.f32.mrf.mxu3 }
 0x3e6   :  { %v1146_v33 = vsel %vm365_vm4, %v1130_v24, -inf }
 0x3e7   :  { %v1147_v8 = vmax.f32 %v1142_v16, %v1146_v33 }
 0x3ec   :  { %1984 = vmatmul.msk.f32.gmra.mxu0 %vm299_vm3, %v2421_v37 }
 0x3ed   :  { %v1133_v41 = vpop.f32.mrf.mxu3 }
 0x3ee   :  { %v1148_v60 = vsel %vm365_vm4, %v1133_v41, -inf }
 0x3ef   :  { %v1149_v37 = vmax.f32 %v1143_v19, %v1148_v60 }
 0x3f1   :  { %v1154_v36 = vmax.f32 %v1147_v8, %v1149_v37  ;;  %v1213_v37 = vpop.permute.xlu0 %1212 }
 0x3f4   :  { %1985 = vmatmul.msk.f32.gmra.mxu0 %vm299_vm3, %v2423_v38 }
 0x3f5   :  { %v1136_v45 = vpop.f32.mrf.mxu3 }
 0x3f6   :  { %v1150_v5 = vsel %vm365_vm4, %v1136_v45, -inf }
 0x3f7   :  { %v1151_v15 = vmax.f32 %v1144_v35, %v1150_v5  ;;  %v618_v5 = vrot.slane %v2527_v20, 4 }
 0x3fc   :  { %1986 = vmatmul.msk.f32.gmra.mxu0 %vm299_vm3, %v2425_v39 }
 0x3fd   :  { %v1139_v38 = vpop.f32.mrf.mxu3 }
 0x3fe   :  { %v1152_v30 = vsel %vm365_vm4, %v1139_v38, -inf }
 0x3ff   :  { %v1153_v63 = vmax.f32 %v1145_v11, %v1152_v30  ;;  %v619_v11 = vadd.f32 %v618_v5, %v2527_v20 }
 0x401   :  { %v1155_v17 = vmax.f32 %v1151_v15, %v1153_v63  ;;  %v620_v15 = vrot.slane %v619_v11, 2 }
 0x403   :  { %v1156_v43 = vmax.f32 %v1154_v36, %v1155_v17 }
 0x404   :  { %1987 = vmatmul.msk.f32.gmra.mxu0 %vm299_vm3, %v2427_v42 }
 0x405   :  { %v1157_v47 = vrot.slane %v1156_v43, 4 }
 0x407   :  { %v1158_v48 = vmax.f32 %v1156_v43, %v1157_v47  ;;  %v55_v47 = vld [vmem:[#allocation6 + $0x68] sm:$0xff] }
 0x409   :  { %v1159_v50 = vrot.slane %v1158_v48, 2 }
 0x40b   :  { %v1160_v25 = vmax.f32 %v1158_v48, %v1159_v50 }
 0x40c   :  { %1988 = vmatmul.msk.f32.gmra.mxu0 %vm299_vm3, %v2429_v44 }
 0x40d   :  { %v1161_v52 = vrot.slane %v1160_v25, 1 }
 0x40f   :  { %v1162_v62 = vmax.f32 %v1160_v25, %v1161_v52  ;;  %v57_v52 = vld [vmem:[#allocation6 + $0x78] sm:$0xff] }
 0x411   :  { %v1170_v39 = vsub.f32 %v1139_v38, %v1162_v62  ;;  %v1169_v13 = vsub.f32 %v1136_v45, %v1162_v62  ;;  %v1168_v61 = vsub.f32 %v1133_v41, %v1162_v62  ;;  %v1167_v7 = vsub.f32 %v1130_v24, %v1162_v62 }
 0x412   :  { %v1166_v53 = vsub.f32 %v1127_v26, %v1162_v62  ;;  %v1165_v55 = vsub.f32 %v1124_v32, %v1162_v62  ;;  %v1164_v2 = vsub.f32 %v1121_v22, %v1162_v62  ;;  %v1163_v42 = vsub.f32 %v2521_v14, %v1162_v62 }
 0x413   :  { %v1185_v10 = vmul.f32 1.442695, %v1170_v39  ;;  %v1183_v18 = vmul.f32 1.442695, %v1169_v13  ;;  %v1181_v57 = vmul.f32 1.442695, %v1168_v61  ;;  %v621_v38 = vadd.f32 %v620_v15, %v619_v11 }
 0x414   :  { %v1179_v23 = vmul.f32 1.442695, %v1167_v7  ;;  %1989 = vmatmul.msk.f32.gmra.mxu0 %vm299_vm3, %v2431_v46  ;;  %v1177_v27 = vmul.f32 1.442695, %v1166_v53  ;;  %v1175_v44 = vmul.f32 1.442695, %v1165_v55 }
 0x415   :  { %2086 = vpow2.f32 %v1185_v10  ;;  %v1173_v28 = vmul.f32 1.442695, %v1164_v2  ;;  %v1171_v29 = vmul.f32 1.442695, %v1163_v42  ;;  %v622_v30 = vrot.slane %v621_v38, 1 }
 0x416   :  { %2088 = vpow2.f32 %v1183_v18 }
 0x417   :  { %2090 = vpow2.f32 %v1181_v57  ;;  %v623_v36 = vadd.f32 %v622_v30, %v621_v38 }
 0x418   :  { %2092 = vpow2.f32 %v1179_v23 }
 0x419   :  { %2094 = vpow2.f32 %v1177_v27 }
 0x41a   :  { %2096 = vpow2.f32 %v1175_v44 }
 0x41b   :  { %v2087_v21 = vpop.eup %2086  ;;  %2098 = vpow2.f32 %v1173_v28 }
 0x41c   :  { %v2089_v32 = vpop.eup %2088  ;;  %1224 = vmatpush.msrb.mxu1 %v2087_v21  ;;  %2100 = vpow2.f32 %v1171_v29  ;;  %v1200_v18 = vsel %vm365_vm4, %v2087_v21, 0.0 }
 0x41d   :  { %v2091_v22 = vpop.eup %2090  ;;  %2102 = vrcp.f32 %v623_v36  ;;  %v1198_v53 = vsel %vm365_vm4, %v2089_v32, 0.0 }
 0x41e   :  { %v2093_v14 = vpop.eup %2092  ;;  %1225 = vmatpush.msrb.mxu1 %v2089_v32  ;;  %v1196_v61 = vsel %vm365_vm4, %v2091_v22, 0.0 }
 0x41f   :  { %v2095_v26 = vpop.eup %2094  ;;  %v1194_v13 = vsel %vm365_vm4, %v2093_v14, 0.0 }
 0x420   :  { %v2097_v24 = vpop.eup %2096  ;;  %1226 = vmatpush.msrb.mxu1 %v2091_v22  ;;  %v1192_v60 = vsel %vm365_vm4, %v2095_v26, 0.0 }
 0x421   :  { %v2099_v46 = vpop.eup %2098  ;;  %v1190_v16 = vsel %vm365_vm4, %v2097_v24, 0.0 }
 0x422   :  { %v2101_v41 = vpop.eup %2100  ;;  %1227 = vmatpush.msrb.mxu1 %v2093_v14  ;;  %v1188_v45 = vsel %vm365_vm4, %v2099_v46, 0.0 }
 0x423   :  { %v1187_v19 = vsel %vm365_vm4, %v2101_v41, 0.0  ;;  %v2103_v63 = vpop.eup %2102 }
 0x424   :  { %1228 = vmatpush.msrb.mxu1 %v2095_v26  ;;  %v1189_v33 = vadd.f32 %v1188_v45, %v1187_v19  ;;  %v625_v17 = vmul.f32 %v2103_v63, %v623_v36 }
 0x426   :  { %1229 = vmatpush.msrb.mxu1 %v2097_v24  ;;  %v1191_v35 = vadd.f32 %v1190_v16, %v1189_v33  ;;  %v626_v43 = vsub.f32 2.0, %v625_v17 }
 0x428   :  { %1230 = vmatpush.msrb.mxu1 %v2099_v46  ;;  %v1193_v8 = vadd.f32 %v1192_v60, %v1191_v35  ;;  %v627_v48 = vmul.f32 %v2103_v63, %v626_v43 }
 0x42a   :  { %1231 = vmatpush.msrb.mxu1 %v2101_v41  ;;  %v1195_v7 = vadd.f32 %v1194_v13, %v1193_v8 }
 0x42b   :  { %2008 = vmatmul.msk.f32.vlgmr.msrb.gmra.mxu1 %vm365_vm4, %v1213_v37 }
 0x42c   :  { %v1197_v10 = vadd.f32 %v1196_v61, %v1195_v7 }
 0x42e   :  { %v1199_v57 = vadd.f32 %v1198_v53, %v1197_v10 }
 0x430   :  { %v2572_v2 = vadd.f32 %v1200_v18, %v1199_v57 }
 0x44a   :  { %1623 = vrot.lane.b32.xlu0 %v2411_v31, %s2281_s0 }
 0x451   :  { %v648_v50 = vpop.f32.mrf.mxu0 }
 0x452   :  { %1869 = vperm.xlu0 %2049, %v55_v47   ;;  %v651_v25 = vmul.f32 %v648_v50, %v627_v48 }
 0x454   :  { %652 = vst.msk [vmem:[#allocation2 + $0x8] sm:$0xff] %vm365_vm4, %v651_v25 }
 0x459   :  { %v726_v20 = vpop.f32.mrf.mxu0 }
 0x45a   :  { %1879 = vperm.xlu0 %2049, %v57_v52   ;;  %v750_v26 = vsel %vm365_vm4, %v726_v20, -inf }
 0x461   :  { %v729_v62 = vpop.f32.mrf.mxu0 }
 0x462   :  { %v751_v28 = vsel %vm365_vm4, %v729_v62, -inf }
 0x469   :  { %v732_v39 = vpop.f32.mrf.mxu0 }
 0x46a   :  { %v752_v21 = vsel %vm365_vm4, %v732_v39, -inf }
 0x471   :  { %v735_v55 = vpop.f32.mrf.mxu0 }
 0x472   :  { %v753_v24 = vsel %vm365_vm4, %v735_v55, -inf }
 0x479   :  { %v738_v23 = vpop.f32.mrf.mxu0 }
 0x47a   :  { %v754_v29 = vsel %vm365_vm4, %v738_v23, -inf }
 0x47b   :  { %v755_v41 = vmax.f32 %v750_v26, %v754_v29 }
 0x481   :  { %v741_v42 = vpop.f32.mrf.mxu0 }
 0x482   :  { %v756_v44 = vsel %vm365_vm4, %v741_v42, -inf }
 0x483   :  { %v757_v14 = vmax.f32 %v751_v28, %v756_v44 }
 0x485   :  { %v762_v19 = vmax.f32 %v755_v41, %v757_v14 }
 0x489   :  { %v744_v27 = vpop.f32.mrf.mxu0 }
 0x48a   :  { %v758_v22 = vsel %vm365_vm4, %v744_v27, -inf }
 0x48b   :  { %v759_v45 = vmax.f32 %v752_v21, %v758_v22 }
 0x491   :  { %v747_v32 = vpop.f32.mrf.mxu0 }
 0x492   :  { %v760_v46 = vsel %vm365_vm4, %v747_v32, -inf }
 0x493   :  { %v761_v16 = vmax.f32 %v753_v24, %v760_v46 }
 0x495   :  { %v763_v33 = vmax.f32 %v759_v45, %v761_v16 }
 0x497   :  { %v764_v60 = vmax.f32 %v762_v19, %v763_v33  ;;  %v2792_v33 = vld [vmem:[#allocation18_spill] sm:$0xff] }
 0x499   :  { %v765_v35 = vrot.slane %v764_v60, 4 }
 0x49b   :  { %v766_v5 = vmax.f32 %v764_v60, %v765_v35  ;;  %v2793_v60 = vld [vmem:[#allocation19_spill] sm:$0xff] }
 0x49d   :  { %v767_v8 = vrot.slane %v766_v5, 2 }
 0x49f   :  { %v768_v37 = vmax.f32 %v766_v5, %v767_v8 }
 0x4a1   :  { %v769_v11 = vrot.slane %v768_v37, 1 }
 0x4a3   :  { %v770_v15 = vmax.f32 %v768_v37, %v769_v11 }
 0x4a5   :  { %v778_v38 = vsub.f32 %v747_v32, %v770_v15  ;;  %v777_v30 = vsub.f32 %v744_v27, %v770_v15  ;;  %v776_v36 = vsub.f32 %v741_v42, %v770_v15  ;;  %v775_v63 = vsub.f32 %v738_v23, %v770_v15 }
 0x4a6   :  { %v773_v17 = vsub.f32 %v732_v39, %v770_v15  ;;  %v772_v48 = vsub.f32 %v729_v62, %v770_v15  ;;  %v771_v25 = vsub.f32 %v726_v20, %v770_v15  ;;  %v774_v13 = vsub.f32 %v735_v55, %v770_v15 }
 0x4a7   :  { %v793_v43 = vmul.f32 1.442695, %v778_v38  ;;  %v791_v47 = vmul.f32 1.442695, %v777_v30  ;;  %v789_v50 = vmul.f32 1.442695, %v776_v36 }
 0x4a8   :  { %v787_v52 = vmul.f32 1.442695, %v775_v63  ;;  %v783_v61 = vmul.f32 1.442695, %v773_v17  ;;  %v781_v7 = vmul.f32 1.442695, %v772_v48 }
 0x4a9   :  { %2104 = vpow2.f32 %v793_v43  ;;  %v779_v53 = vmul.f32 1.442695, %v771_v25  ;;  %v785_v10 = vmul.f32 1.442695, %v774_v13 }
 0x4aa   :  { %2106 = vpow2.f32 %v791_v47 }
 0x4ab   :  { %2108 = vpow2.f32 %v789_v50 }
 0x4ac   :  { %2110 = vpow2.f32 %v787_v52 }
 0x4ad   :  { %2112 = vpow2.f32 %v783_v61 }
 0x4ae   :  { %2114 = vpow2.f32 %v781_v7 }
 0x4af   :  { %v2105_v18 = vpop.eup %2104  ;;  %2116 = vpow2.f32 %v779_v53 }
 0x4b0   :  { %831 = vmatpush.msrb.mxu2 %v2105_v18  ;;  %v2107_v39 = vpop.eup %2106  ;;  %2118 = vpow2.f32 %v785_v10  ;;  %v808_v16 = vsel %vm365_vm4, %v2105_v18, 0.0 }
 0x4b1   :  { %v2109_v62 = vpop.eup %2108  ;;  %v806_v41 = vsel %vm365_vm4, %v2107_v39, 0.0 }
 0x4b2   :  { %832 = vmatpush.msrb.mxu2 %v2107_v39  ;;  %v2111_v20 = vpop.eup %2110  ;;  %v804_v24 = vsel %vm365_vm4, %v2109_v62, 0.0 }
 0x4b3   :  { %v2113_v57 = vpop.eup %2112  ;;  %v802_v26 = vsel %vm365_vm4, %v2111_v20, 0.0 }
 0x4b4   :  { %833 = vmatpush.msrb.mxu2 %v2109_v62  ;;  %v2115_v55 = vpop.eup %2114  ;;  %v798_v29 = vsel %vm365_vm4, %v2113_v57, 0.0 }
 0x4b5   :  { %v2117_v23 = vpop.eup %2116  ;;  %v796_v42 = vsel %vm365_vm4, %v2115_v55, 0.0 }
 0x4b6   :  { %834 = vmatpush.msrb.mxu2 %v2111_v20  ;;  %v2119_v27 = vpop.eup %2118  ;;  %v795_v44 = vsel %vm365_vm4, %v2117_v23, 0.0 }
 0x4b7   :  { %v797_v28 = vadd.f32 %v796_v42, %v795_v44  ;;  %v800_v14 = vsel %vm365_vm4, %v2119_v27, 0.0 }
 0x4b8   :  { %835 = vmatpush.msrb.mxu2 %v2119_v27 }
 0x4b9   :  { %v799_v22 = vadd.f32 %v798_v29, %v797_v28 }
 0x4ba   :  { %836 = vmatpush.msrb.mxu2 %v2113_v57 }
 0x4bb   :  { %v801_v32 = vadd.f32 %v800_v14, %v799_v22 }
 0x4bc   :  { %837 = vmatpush.msrb.mxu2 %v2115_v55 }
 0x4bd   :  { %v803_v21 = vadd.f32 %v802_v26, %v801_v32 }
 0x4be   :  { %838 = vmatpush.msrb.mxu2 %v2117_v23 }
 0x4bf   :  { %1990 = vmatmul.msk.f32.vlgmr.msrb.gmra.mxu2 %vm365_vm4, %v2411_v31  ;;  %v805_v46 = vadd.f32 %v804_v24, %v803_v21  ;;  %v2790_v31 = vld [vmem:[#allocation16_spill] sm:$0xff] }
 0x4c0   :  { %916 = vmatpush.msra.mxu2 %v2492_v0  ;;  %v2791_v0 = vld [vmem:[#allocation17_spill] sm:$0xff] }
 0x4c1   :  { %v807_v45 = vadd.f32 %v806_v41, %v805_v46 }
 0x4c3   :  { %v809_v19 = vadd.f32 %v808_v16, %v807_v45 }
 0x4c7   :  { %1991 = vmatmul.msk.f32.vlgmr.msra.gmra.mxu2 %vm299_vm3, %v2372_v3  ;;  %v810_v3 = vrot.slane %v809_v19, 4 }
 0x4cf   :  { %1992 = vmatmul.msk.f32.gmra.mxu2 %vm299_vm3, %v2378_v6  ;;  %v811_v6 = vadd.f32 %v810_v3, %v809_v19 }
 0x4d1   :  { %v812_v35 = vrot.slane %v811_v6, 2 }
 0x4d3   :  { %v813_v5 = vadd.f32 %v812_v35, %v811_v6 }
 0x4d7   :  { %1993 = vmatmul.msk.f32.gmra.mxu2 %vm299_vm3, %v2383_v9  ;;  %v814_v9 = vrot.slane %v813_v5, 1 }
 0x4d9   :  { %v815_v8 = vadd.f32 %v814_v9, %v813_v5 }
 0x4db   :  { %2120 = vrcp.f32 %v815_v8 }
 0x4df   :  { %1994 = vmatmul.msk.f32.gmra.mxu2 %vm299_vm3, %v2388_v12 }
 0x4e1   :  { %v2121_v12 = vpop.eup %2120 }
 0x4e2   :  { %v817_v37 = vmul.f32 %v2121_v12, %v815_v8 }
 0x4e4   :  { %v818_v11 = vsub.f32 2.0, %v817_v37 }
 0x4e6   :  { %v819_v15 = vmul.f32 %v2121_v12, %v818_v11 }
 0x4e7   :  { %1995 = vmatmul.msk.f32.gmra.mxu2 %vm299_vm3, %v2790_v31 }
 0x4ef   :  { %1996 = vmatmul.msk.f32.gmra.mxu2 %vm299_vm3, %v2791_v0 }
 0x4f7   :  { %1997 = vmatmul.msk.f32.gmra.mxu2 %vm299_vm3, %v2792_v33 }
 0x4ff   :  { %1998 = vmatmul.msk.f32.gmra.mxu2 %vm299_vm3, %v2793_v60 }
 0x542   :  { %v840_v38 = vpop.f32.mrf.mxu2 }
 0x543   :  { %v843_v30 = vmul.f32 %v840_v38, %v819_v15 }
 0x545   :  { %844 = vst.msk [vmem:[#allocation2 + $0x10] sm:$0xff] %vm365_vm4, %v843_v30 }
 0x54a   :  { %v918_v36 = vpop.f32.mrf.mxu2 }
 0x54b   :  { %v942_v10 = vsel %vm365_vm4, %v918_v36, -inf }
 0x552   :  { %v921_v63 = vpop.f32.mrf.mxu2 }
 0x553   :  { %v943_v52 = vsel %vm365_vm4, %v921_v63, -inf }
 0x55a   :  { %v924_v17 = vpop.f32.mrf.mxu2 }
 0x55b   :  { %v944_v18 = vsel %vm365_vm4, %v924_v17, -inf }
 0x562   :  { %v927_v43 = vpop.f32.mrf.mxu2 }
 0x563   :  { %v945_v39 = vsel %vm365_vm4, %v927_v43, -inf }
 0x56a   :  { %v930_v47 = vpop.f32.mrf.mxu2 }
 0x56b   :  { %v946_v13 = vsel %vm365_vm4, %v930_v47, -inf }
 0x56c   :  { %v947_v20 = vmax.f32 %v942_v10, %v946_v13 }
 0x572   :  { %v933_v48 = vpop.f32.mrf.mxu2 }
 0x573   :  { %v948_v25 = vsel %vm365_vm4, %v933_v48, -inf }
 0x574   :  { %v949_v7 = vmax.f32 %v943_v52, %v948_v25 }
 0x576   :  { %v954_v23 = vmax.f32 %v947_v20, %v949_v7 }
 0x57a   :  { %v936_v50 = vpop.f32.mrf.mxu2 }
 0x57b   :  { %v950_v61 = vsel %vm365_vm4, %v936_v50, -inf }
 0x57c   :  { %v951_v57 = vmax.f32 %v944_v18, %v950_v61 }
 0x582   :  { %v939_v53 = vpop.f32.mrf.mxu2 }
 0x583   :  { %v952_v62 = vsel %vm365_vm4, %v939_v53, -inf }
 0x584   :  { %v953_v55 = vmax.f32 %v945_v39, %v952_v62 }
 0x586   :  { %v955_v42 = vmax.f32 %v951_v57, %v953_v55 }
 0x588   :  { %v956_v27 = vmax.f32 %v954_v23, %v955_v42 }
 0x58a   :  { %v957_v44 = vrot.slane %v956_v27, 4 }
 0x58c   :  { %v958_v28 = vmax.f32 %v956_v27, %v957_v44 }
 0x58e   :  { %v959_v29 = vrot.slane %v958_v28, 2 }
 0x590   :  { %v960_v22 = vmax.f32 %v958_v28, %v959_v29 }
 0x592   :  { %v961_v14 = vrot.slane %v960_v22, 1 }
 0x594   :  { %v962_v32 = vmax.f32 %v960_v22, %v961_v14 }
 0x596   :  { %v963_v26 = vsub.f32 %v918_v36, %v962_v32  ;;  %v964_v21 = vsub.f32 %v921_v63, %v962_v32  ;;  %v965_v24 = vsub.f32 %v924_v17, %v962_v32  ;;  %v966_v46 = vsub.f32 %v927_v43, %v962_v32 }
 0x597   :  { %v967_v41 = vsub.f32 %v930_v47, %v962_v32  ;;  %v968_v45 = vsub.f32 %v933_v48, %v962_v32  ;;  %v970_v0 = vsub.f32 %v939_v53, %v962_v32  ;;  %v969_v60 = vsub.f32 %v936_v50, %v962_v32 }
 0x598   :  { %v971_v16 = vmul.f32 1.442695, %v963_v26  ;;  %v973_v19 = vmul.f32 1.442695, %v964_v21  ;;  %v975_v31 = vmul.f32 1.442695, %v965_v24 }
 0x599   :  { %v977_v33 = vmul.f32 1.442695, %v966_v46  ;;  %v979_v3 = vmul.f32 1.442695, %v967_v41  ;;  %v981_v6 = vmul.f32 1.442695, %v968_v45 }
 0x59a   :  { %2122 = vpow2.f32 %v971_v16  ;;  %v985_v35 = vmul.f32 1.442695, %v970_v0  ;;  %v983_v5 = vmul.f32 1.442695, %v969_v60 }
 0x59b   :  { %2124 = vpow2.f32 %v973_v19 }
 0x59c   :  { %2126 = vpow2.f32 %v975_v31 }
 0x59d   :  { %2128 = vpow2.f32 %v977_v33 }
 0x59e   :  { %2130 = vpow2.f32 %v979_v3 }
 0x59f   :  { %2132 = vpow2.f32 %v981_v6 }
 0x5a0   :  { %v2123_v9 = vpop.eup %2122  ;;  %2134 = vpow2.f32 %v985_v35 }
 0x5a1   :  { %v2125_v8 = vpop.eup %2124  ;;  %v987_v12 = vsel %vm365_vm4, %v2123_v9, 0.0  ;;  %2136 = vpow2.f32 %v983_v5 }
 0x5a2   :  { %v2127_v37 = vpop.eup %2126  ;;  %v988_v11 = vsel %vm365_vm4, %v2125_v8, 0.0 }
 0x5a3   :  { %v2129_v15 = vpop.eup %2128  ;;  %v989_v38 = vadd.f32 %v988_v11, %v987_v12  ;;  %v990_v30 = vsel %vm365_vm4, %v2127_v37, 0.0 }
 0x5a4   :  { %v2131_v36 = vpop.eup %2130  ;;  %v992_v43 = vsel %vm365_vm4, %v2129_v15, 0.0 }
 0x5a5   :  { %v991_v63 = vadd.f32 %v990_v30, %v989_v38  ;;  %v2133_v17 = vpop.eup %2132  ;;  %v994_v50 = vsel %vm365_vm4, %v2131_v36, 0.0 }
 0x5a6   :  { %v2135_v47 = vpop.eup %2134  ;;  %v996_v13 = vsel %vm365_vm4, %v2133_v17, 0.0 }
 0x5a7   :  { %v993_v48 = vadd.f32 %v992_v43, %v991_v63  ;;  %1023 = vmatpush.msra.mxu0 %v2135_v47  ;;  %v2137_v25 = vpop.eup %2136  ;;  %v1000_v10 = vsel %vm365_vm4, %v2135_v47, 0.0 }
 0x5a8   :  { %v998_v7 = vsel %vm365_vm4, %v2137_v25, 0.0 }
 0x5a9   :  { %v995_v52 = vadd.f32 %v994_v50, %v993_v48  ;;  %1024 = vmatpush.msra.mxu0 %v2137_v25 }
 0x5ab   :  { %v997_v61 = vadd.f32 %v996_v13, %v995_v52  ;;  %1025 = vmatpush.msra.mxu0 %v2133_v17  ;;  %v1419_v52 = vpop.permute.xlu0 %1418 }
 0x5ad   :  { %v999_v53 = vadd.f32 %v998_v7, %v997_v61  ;;  %1026 = vmatpush.msra.mxu0 %v2131_v36 }
 0x5af   :  { %v1001_v18 = vadd.f32 %v1000_v10, %v999_v53  ;;  %1027 = vmatpush.msra.mxu0 %v2129_v15 }
 0x5b1   :  { %1028 = vmatpush.msra.mxu0 %v2127_v37 }
 0x5b3   :  { %1029 = vmatpush.msra.mxu0 %v2125_v8 }
 0x5b5   :  { %1030 = vmatpush.msra.mxu0 %v2123_v9 }
 0x5b6   :  { %1999 = vmatmul.msk.f32.vlgmr.msra.gmra.mxu0 %vm365_vm4, %v2462_v49  ;;  %v1002_v49 = vrot.slane %v1001_v18, 4 }
 0x5b7   :  { %1322 = vmatpush.msrb.mxu0 %v2478_v1 }
 0x5be   :  { %2009 = vmatmul.msk.f32.vlgmr.msrb.gmra.mxu0 %vm299_vm3, %v2474_v51  ;;  %v1003_v51 = vadd.f32 %v1002_v49, %v1001_v18 }
 0x5c6   :  { %2010 = vmatmul.msk.f32.gmra.mxu0 %vm299_vm3, %v2476_v58  ;;  %v1004_v58 = vrot.slane %v1003_v51, 2 }
 0x5c8   :  { %v1005_v1 = vadd.f32 %v1004_v58, %v1003_v51 }
 0x5ce   :  { %2011 = vmatmul.msk.f32.gmra.mxu0 %vm299_vm3, %v2480_v4  ;;  %v1006_v4 = vrot.slane %v1005_v1, 1 }
 0x5d0   :  { %v1007_v39 = vadd.f32 %v1006_v4, %v1005_v1 }
 0x5d2   :  { %2138 = vrcp.f32 %v1007_v39 }
 0x5d6   :  { %2012 = vmatmul.msk.f32.gmra.mxu0 %vm299_vm3, %v2483_v56 }
 0x5d8   :  { %v2139_v56 = vpop.eup %2138 }
 0x5d9   :  { %v1009_v62 = vmul.f32 %v2139_v56, %v1007_v39 }
 0x5db   :  { %v1010_v20 = vsub.f32 2.0, %v1009_v62 }
 0x5de   :  { %2013 = vmatmul.msk.f32.gmra.mxu0 %vm299_vm3, %v2488_v59  ;;  %v1011_v59 = vmul.f32 %v2139_v56, %v1010_v20 }
 0x5e6   :  { %2014 = vmatmul.msk.f32.gmra.mxu0 %vm299_vm3, %v2497_v54 }
 0x5ee   :  { %2015 = vmatmul.msk.f32.gmra.mxu0 %vm299_vm3, %v2500_v40 }
 0x5f6   :  { %2016 = vmatmul.msk.f32.gmra.mxu0 %vm299_vm3, %v2505_v34 }
 0x633   :  { %v1032_v57 = vpop.f32.mrf.mxu0 }
 0x634   :  { %v1035_v55 = vmul.f32 %v1032_v57, %v1011_v59  ;;  %v1486_v59 = vpop.permute.xlu0 %1485 }
 0x636   :  { %1036 = vst.msk [vmem:[#allocation2 + $0x18] sm:$0xff] %vm365_vm4, %v1035_v55 }
 0x63b   :  { %v1324_v54 = vpop.f32.mrf.mxu0 }
 0x63c   :  { %v1348_v21 = vsel %vm365_vm4, %v1324_v54, -inf }
 0x643   :  { %v1327_v40 = vpop.f32.mrf.mxu0 }
 0x644   :  { %v1349_v29 = vsel %vm365_vm4, %v1327_v40, -inf }
 0x64b   :  { %v1330_v23 = vpop.f32.mrf.mxu0 }
 0x64c   :  { %v1350_v24 = vsel %vm365_vm4, %v1330_v23, -inf }
 0x653   :  { %v1333_v42 = vpop.f32.mrf.mxu0 }
 0x654   :  { %v1351_v46 = vsel %vm365_vm4, %v1333_v42, -inf }
 0x65b   :  { %v1336_v34 = vpop.f32.mrf.mxu0 }
 0x65c   :  { %v1352_v22 = vsel %vm365_vm4, %v1336_v34, -inf }
 0x65d   :  { %v1353_v45 = vmax.f32 %v1348_v21, %v1352_v22 }
 0x663   :  { %v1339_v27 = vpop.f32.mrf.mxu0 }
 0x664   :  { %v1354_v28 = vsel %vm365_vm4, %v1339_v27, -inf }
 0x665   :  { %v1355_v32 = vmax.f32 %v1349_v29, %v1354_v28  ;;  %v1468_v28 = vpop.trf.xlu0 }
 0x667   :  { %v1360_v31 = vmax.f32 %v1353_v45, %v1355_v32 }
 0x66b   :  { %v1342_v44 = vpop.f32.mrf.mxu0 }
 0x66c   :  { %v1356_v14 = vsel %vm365_vm4, %v1342_v44, -inf }
 0x66d   :  { %v1357_v16 = vmax.f32 %v1350_v24, %v1356_v14  ;;  %v1469_v29 = vpop.trf.xlu0 }
 0x673   :  { %v1345_v26 = vpop.f32.mrf.mxu0 }
 0x674   :  { %v1358_v41 = vsel %vm365_vm4, %v1345_v26, -inf }
 0x675   :  { %v1359_v19 = vmax.f32 %v1351_v46, %v1358_v41  ;;  %v1470_v22 = vpop.trf.xlu0 }
 0x677   :  { %v1361_v0 = vmax.f32 %v1357_v16, %v1359_v19 }
 0x679   :  { %v1362_v33 = vmax.f32 %v1360_v31, %v1361_v0 }
 0x67b   :  { %v1363_v60 = vrot.slane %v1362_v33, 4 }
 0x67d   :  { %v1364_v3 = vmax.f32 %v1362_v33, %v1363_v60  ;;  %v1471_v14 = vpop.trf.xlu0  ;;  %v2671_v60 = vpop.f32.mrf.mxu1 }
 0x67f   :  { %v1365_v6 = vrot.slane %v1364_v3, 2 }
 0x681   :  { %v1366_v35 = vmax.f32 %v1364_v3, %v1365_v6 }
 0x683   :  { %v1367_v5 = vrot.slane %v1366_v35, 1 }
 0x685   :  { %v1368_v9 = vmax.f32 %v1366_v35, %v1367_v5  ;;  %v1472_v32 = vpop.trf.xlu0 }
 0x687   :  { %v1369_v8 = vsub.f32 %v1324_v54, %v1368_v9  ;;  %v1370_v12 = vsub.f32 %v1327_v40, %v1368_v9  ;;  %v1371_v37 = vsub.f32 %v1330_v23, %v1368_v9  ;;  %v1372_v11 = vsub.f32 %v1333_v42, %v1368_v9 }
 0x688   :  { %v1373_v15 = vsub.f32 %v1336_v34, %v1368_v9  ;;  %v1374_v38 = vsub.f32 %v1339_v27, %v1368_v9  ;;  %v1376_v17 = vsub.f32 %v1345_v26, %v1368_v9  ;;  %v1375_v47 = vsub.f32 %v1342_v44, %v1368_v9  ;;  %v2674_v9 = vpop.permute.xlu2 %1690 }
 0x689   :  { %v1377_v30 = vmul.f32 1.442695, %v1369_v8  ;;  %v1379_v36 = vmul.f32 1.442695, %v1370_v12  ;;  %v1381_v63 = vmul.f32 1.442695, %v1371_v37 }
 0x68a   :  { %v1383_v43 = vmul.f32 1.442695, %v1372_v11  ;;  %v1385_v48 = vmul.f32 1.442695, %v1373_v15  ;;  %v1387_v50 = vmul.f32 1.442695, %v1374_v38 }
 0x68b   :  { %2140 = vpow2.f32 %v1377_v30  ;;  %v1391_v25 = vmul.f32 1.442695, %v1376_v17  ;;  %v1389_v13 = vmul.f32 1.442695, %v1375_v47 }
 0x68c   :  { %2142 = vpow2.f32 %v1379_v36 }
 0x68d   :  { %2144 = vpow2.f32 %v1381_v63  ;;  %v1473_v26 = vpop.trf.xlu0 }
 0x68e   :  { %2146 = vpow2.f32 %v1383_v43 }
 0x68f   :  { %2148 = vpow2.f32 %v1385_v48 }
 0x690   :  { %2150 = vpow2.f32 %v1387_v50  ;;  %v2676_v12 = vpop.trf.xlu2 }
 0x691   :  { %v2141_v61 = vpop.eup %2140  ;;  %2152 = vpow2.f32 %v1391_v25 }
 0x692   :  { %v2143_v7 = vpop.eup %2142  ;;  %v1393_v53 = vsel %vm365_vm4, %v2141_v61, 0.0  ;;  %2154 = vpow2.f32 %v1389_v13 }
 0x693   :  { %v2145_v10 = vpop.eup %2144  ;;  %v1394_v18 = vsel %vm365_vm4, %v2143_v7, 0.0 }
 0x694   :  { %v2147_v49 = vpop.eup %2146  ;;  %v1395_v51 = vadd.f32 %v1394_v18, %v1393_v53  ;;  %v1396_v58 = vsel %vm365_vm4, %v2145_v10, 0.0 }
 0x695   :  { %v2149_v1 = vpop.eup %2148  ;;  %v1398_v56 = vsel %vm365_vm4, %v2147_v49, 0.0  ;;  %v1474_v21 = vpop.trf.xlu0 }
 0x696   :  { %v1397_v4 = vadd.f32 %v1396_v58, %v1395_v51  ;;  %v2151_v39 = vpop.eup %2150  ;;  %v1400_v57 = vsel %vm365_vm4, %v2149_v1, 0.0 }
 0x697   :  { %v2153_v62 = vpop.eup %2152  ;;  %v1402_v40 = vsel %vm365_vm4, %v2151_v39, 0.0 }
 0x698   :  { %v1399_v20 = vadd.f32 %v1398_v56, %v1397_v4  ;;  %1430 = vmatpush.msra.mxu1 %v2153_v62  ;;  %v2155_v55 = vpop.eup %2154  ;;  %v1406_v27 = vsel %vm365_vm4, %v2153_v62, 0.0  ;;  %v2678_v11 = vpop.trf.xlu2 }
 0x699   :  { %v1404_v42 = vsel %vm365_vm4, %v2155_v55, 0.0 }
 0x69a   :  { %v1401_v54 = vadd.f32 %v1400_v57, %v1399_v20  ;;  %1431 = vmatpush.msra.mxu1 %v2155_v55 }
 0x69c   :  { %v1403_v23 = vadd.f32 %v1402_v40, %v1401_v54  ;;  %1432 = vmatpush.msra.mxu1 %v2151_v39 }
 0x69d   :  { %v1475_v24 = vpop.trf.xlu0 }
 0x69e   :  { %v1405_v34 = vadd.f32 %v1404_v42, %v1403_v23  ;;  %1433 = vmatpush.msra.mxu1 %v2149_v1 }
 0x6a0   :  { %v1407_v44 = vadd.f32 %v1406_v27, %v1405_v34  ;;  %1434 = vmatpush.msra.mxu1 %v2147_v49  ;;  %v2680_v30 = vpop.trf.xlu2 }
 0x6a2   :  { %1435 = vmatpush.msra.mxu1 %v2145_v10  ;;  %v1408_v46 = vrot.slane %v1407_v44, 4 }
 0x6a4   :  { %1436 = vmatpush.msra.mxu1 %v2143_v7  ;;  %v1409_v41 = vadd.f32 %v1408_v46, %v1407_v44 }
 0x6a6   :  { %1437 = vmatpush.msra.mxu1 %v2141_v61  ;;  %v1410_v45 = vrot.slane %v1409_v41, 2 }
 0x6a7   :  { %2017 = vmatmul.msk.f32.vlgmr.msra.gmra.mxu1 %vm365_vm4, %v1419_v52 }
 0x6a8   :  { %1527 = vmatpush.msrb.mxu1 %v1486_v59  ;;  %v1411_v16 = vadd.f32 %v1410_v45, %v1409_v41  ;;  %v2682_v63 = vpop.trf.xlu2 }
 0x6aa   :  { %v1412_v19 = vrot.slane %v1411_v16, 1 }
 0x6ac   :  { %v1413_v31 = vadd.f32 %v1412_v19, %v1411_v16 }
 0x6ae   :  { %2156 = vrcp.f32 %v1413_v31 }
 0x6af   :  { %2018 = vmatmul.msk.f32.vlgmr.msrb.gmra.mxu1 %vm299_vm3, %v1468_v28 }
 0x6b0   :  { %v2684_v43 = vpop.trf.xlu2 }
 0x6b4   :  { %v2157_v0 = vpop.eup %2156 }
 0x6b5   :  { %v1415_v33 = vmul.f32 %v2157_v0, %v1413_v31 }
 0x6b7   :  { %2019 = vmatmul.msk.f32.gmra.mxu1 %vm299_vm3, %v1469_v29  ;;  %v1416_v3 = vsub.f32 2.0, %v1415_v33 }
 0x6b8   :  { %v2690_v13 = vpop.trf.xlu2 }
 0x6b9   :  { %v1417_v6 = vmul.f32 %v2157_v0, %v1416_v3 }
 0x6bf   :  { %2020 = vmatmul.msk.f32.gmra.mxu1 %vm299_vm3, %v1470_v22 }
 0x6c0   :  { %v2696_v20 = vpop.trf.xlu2 }
 0x6c7   :  { %2021 = vmatmul.msk.f32.gmra.mxu1 %vm299_vm3, %v1471_v14 }
 0x6c8   :  { %v2698_v23 = vpop.trf.xlu2 }
 0x6cf   :  { %2022 = vmatmul.msk.f32.gmra.mxu1 %vm299_vm3, %v1472_v32 }
 0x6d7   :  { %2023 = vmatmul.msk.f32.gmra.mxu1 %vm299_vm3, %v1473_v26 }
 0x6df   :  { %2024 = vmatmul.msk.f32.gmra.mxu1 %vm299_vm3, %v1474_v21 }
 0x6e7   :  { %2025 = vmatmul.msk.f32.gmra.mxu1 %vm299_vm3, %v1475_v24 }
 0x724   :  { %v1439_v35 = vpop.f32.mrf.mxu1 }
 0x725   :  { %v1442_v5 = vmul.f32 %v1439_v35, %v1417_v6 }
 0x727   :  { %1444 = vrot.lane.b32.xlu2 %v1442_v5, %s2281_s0 }
 0x72c   :  { %v1529_v8 = vpop.f32.mrf.mxu1 }
 0x72d   :  { %v1553_v53 = vsel %vm365_vm4, %v1529_v8, -inf }
 0x734   :  { %v1532_v37 = vpop.f32.mrf.mxu1 }
 0x735   :  { %v1554_v50 = vsel %vm365_vm4, %v1532_v37, -inf }
 0x73c   :  { %v1535_v15 = vpop.f32.mrf.mxu1 }
 0x73d   :  { %v1555_v10 = vsel %vm365_vm4, %v1535_v15, -inf }
 0x744   :  { %v1538_v38 = vpop.f32.mrf.mxu1 }
 0x745   :  { %v1556_v18 = vsel %vm365_vm4, %v1538_v38, -inf }
 0x74c   :  { %v1541_v36 = vpop.f32.mrf.mxu1 }
 0x74d   :  { %v1557_v25 = vsel %vm365_vm4, %v1541_v36, -inf }
 0x74e   :  { %v1558_v51 = vmax.f32 %v1553_v53, %v1557_v25 }
 0x754   :  { %v1544_v17 = vpop.f32.mrf.mxu1 }
 0x755   :  { %v1559_v48 = vsel %vm365_vm4, %v1544_v17, -inf }
 0x756   :  { %v1560_v61 = vmax.f32 %v1554_v50, %v1559_v48 }
 0x758   :  { %v1565_v4 = vmax.f32 %v1558_v51, %v1560_v61 }
 0x75c   :  { %v1547_v47 = vpop.f32.mrf.mxu1 }
 0x75d   :  { %v1561_v52 = vsel %vm365_vm4, %v1547_v47, -inf }
 0x75e   :  { %v1562_v58 = vmax.f32 %v1555_v10, %v1561_v52 }
 0x764   :  { %v1550_v7 = vpop.f32.mrf.mxu1 }
 0x765   :  { %v1563_v49 = vsel %vm365_vm4, %v1550_v7, -inf }
 0x766   :  { %v1564_v1 = vmax.f32 %v1556_v18, %v1563_v49  ;;  %v1624_v49 = vpop.permute.xlu0 %1623 }
 0x768   :  { %v1566_v39 = vmax.f32 %v1562_v58, %v1564_v1 }
 0x76a   :  { %v1567_v56 = vmax.f32 %v1565_v4, %v1566_v39 }
 0x76c   :  { %v1568_v62 = vrot.slane %v1567_v56, 4 }
 0x76e   :  { %v1569_v59 = vmax.f32 %v1567_v56, %v1568_v62 }
 0x770   :  { %v1570_v57 = vrot.slane %v1569_v59, 2 }
 0x772   :  { %v1571_v55 = vmax.f32 %v1569_v59, %v1570_v57 }
 0x774   :  { %v1572_v54 = vrot.slane %v1571_v55, 1 }
 0x776   :  { %v1573_v40 = vmax.f32 %v1571_v55, %v1572_v54 }
 0x778   :  { %v1574_v42 = vsub.f32 %v1529_v8, %v1573_v40  ;;  %v1575_v34 = vsub.f32 %v1532_v37, %v1573_v40  ;;  %v1576_v27 = vsub.f32 %v1535_v15, %v1573_v40  ;;  %v1577_v44 = vsub.f32 %v1538_v38, %v1573_v40 }
 0x779   :  { %v1578_v28 = vsub.f32 %v1541_v36, %v1573_v40  ;;  %v1579_v29 = vsub.f32 %v1544_v17, %v1573_v40  ;;  %v1581_v26 = vsub.f32 %v1550_v7, %v1573_v40  ;;  %v1580_v24 = vsub.f32 %v1547_v47, %v1573_v40 }
 0x77a   :  { %v1582_v22 = vmul.f32 1.442695, %v1574_v42  ;;  %v1584_v14 = vmul.f32 1.442695, %v1575_v34  ;;  %v1586_v32 = vmul.f32 1.442695, %v1576_v27 }
 0x77b   :  { %v1588_v21 = vmul.f32 1.442695, %v1577_v44  ;;  %v1590_v46 = vmul.f32 1.442695, %v1578_v28  ;;  %v1592_v41 = vmul.f32 1.442695, %v1579_v29 }
 0x77c   :  { %2158 = vpow2.f32 %v1582_v22  ;;  %v1596_v45 = vmul.f32 1.442695, %v1581_v26  ;;  %v1594_v16 = vmul.f32 1.442695, %v1580_v24 }
 0x77d   :  { %2160 = vpow2.f32 %v1584_v14 }
 0x77e   :  { %2162 = vpow2.f32 %v1586_v32 }
 0x77f   :  { %2164 = vpow2.f32 %v1588_v21 }
 0x780   :  { %2166 = vpow2.f32 %v1590_v46 }
 0x781   :  { %v1445_v19 = vpop.permute.xlu2 %1444  ;;  %2168 = vpow2.f32 %v1592_v41 }
 0x782   :  { %v2159_v31 = vpop.eup %2158  ;;  %1447 = vst.msk [vmem:[#allocation2 + $0x8] sm:$0xff] %vm1241_vm5, %v1445_v19  ;;  %2170 = vpow2.f32 %v1596_v45 }
 0x783   :  { %v2161_v0 = vpop.eup %2160  ;;  %v1598_v33 = vsel %vm365_vm4, %v2159_v31, 0.0  ;;  %2172 = vpow2.f32 %v1594_v16 }
 0x784   :  { %v2163_v3 = vpop.eup %2162  ;;  %v1599_v6 = vsel %vm365_vm4, %v2161_v0, 0.0 }
 0x785   :  { %v2165_v35 = vpop.eup %2164  ;;  %v1600_v5 = vadd.f32 %v1599_v6, %v1598_v33  ;;  %v1601_v8 = vsel %vm365_vm4, %v2163_v3, 0.0 }
 0x786   :  { %v2167_v37 = vpop.eup %2166  ;;  %v1603_v36 = vsel %vm365_vm4, %v2165_v35, 0.0 }
 0x787   :  { %v1602_v15 = vadd.f32 %v1601_v8, %v1600_v5  ;;  %v2169_v38 = vpop.eup %2168  ;;  %v1605_v48 = vsel %vm365_vm4, %v2167_v37, 0.0 }
 0x788   :  { %v2171_v17 = vpop.eup %2170  ;;  %v1607_v52 = vsel %vm365_vm4, %v2169_v38, 0.0 }
 0x789   :  { %v1604_v47 = vadd.f32 %v1603_v36, %v1602_v15  ;;  %1635 = vmatpush.msrb.mxu2 %v2171_v17  ;;  %v2173_v50 = vpop.eup %2172  ;;  %v1611_v10 = vsel %vm365_vm4, %v2171_v17, 0.0 }
 0x78a   :  { %v1609_v7 = vsel %vm365_vm4, %v2173_v50, 0.0 }
 0x78b   :  { %v1606_v25 = vadd.f32 %v1605_v48, %v1604_v47  ;;  %1636 = vmatpush.msrb.mxu2 %v2173_v50 }
 0x78d   :  { %v1608_v61 = vadd.f32 %v1607_v52, %v1606_v25  ;;  %1637 = vmatpush.msrb.mxu2 %v2169_v38 }
 0x78f   :  { %v1610_v53 = vadd.f32 %v1609_v7, %v1608_v61  ;;  %1638 = vmatpush.msrb.mxu2 %v2167_v37 }
 0x791   :  { %v1612_v18 = vadd.f32 %v1611_v10, %v1610_v53  ;;  %1639 = vmatpush.msrb.mxu2 %v2165_v35 }
 0x793   :  { %1640 = vmatpush.msrb.mxu2 %v2163_v3 }
 0x795   :  { %1641 = vmatpush.msrb.mxu2 %v2161_v0 }
 0x797   :  { %1642 = vmatpush.msrb.mxu2 %v2159_v31 }
 0x798   :  { %2026 = vmatmul.msk.f32.vlgmr.msrb.gmra.mxu2 %vm365_vm4, %v1624_v49 }
 0x799   :  { %1732 = vmatpush.msra.mxu2 %v2674_v9  ;;  %v1613_v9 = vrot.slane %v1612_v18, 4 }
 0x7a0   :  { %2027 = vmatmul.msk.f32.vlgmr.msra.gmra.mxu2 %vm299_vm3, %v2676_v12  ;;  %v1614_v12 = vadd.f32 %v1613_v9, %v1612_v18 }
 0x7a8   :  { %2028 = vmatmul.msk.f32.gmra.mxu2 %vm299_vm3, %v2678_v11  ;;  %v1615_v11 = vrot.slane %v1614_v12, 2 }
 0x7aa   :  { %v1616_v51 = vadd.f32 %v1615_v11, %v1614_v12 }
 0x7b0   :  { %2029 = vmatmul.msk.f32.gmra.mxu2 %vm299_vm3, %v2680_v30  ;;  %v1617_v30 = vrot.slane %v1616_v51, 1 }
 0x7b2   :  { %v1618_v58 = vadd.f32 %v1617_v30, %v1616_v51 }
 0x7b4   :  { %2174 = vrcp.f32 %v1618_v58 }
 0x7b8   :  { %2030 = vmatmul.msk.f32.gmra.mxu2 %vm299_vm3, %v2682_v63 }
 0x7ba   :  { %v2175_v63 = vpop.eup %2174 }
 0x7bb   :  { %v1620_v1 = vmul.f32 %v2175_v63, %v1618_v58 }
 0x7bd   :  { %v1621_v4 = vsub.f32 2.0, %v1620_v1 }
 0x7c0   :  { %2031 = vmatmul.msk.f32.gmra.mxu2 %vm299_vm3, %v2684_v43  ;;  %v1622_v43 = vmul.f32 %v2175_v63, %v1621_v4 }
 0x7c8   :  { %2032 = vmatmul.msk.f32.gmra.mxu2 %vm299_vm3, %v2690_v13 }
 0x7d0   :  { %2033 = vmatmul.msk.f32.gmra.mxu2 %vm299_vm3, %v2696_v20 }
 0x7d8   :  { %2034 = vmatmul.msk.f32.gmra.mxu2 %vm299_vm3, %v2698_v23 }
 0x81b   :  { %v1644_v39 = vpop.f32.mrf.mxu2 }
 0x81c   :  { %v1647_v56 = vmul.f32 %v1644_v39, %v1622_v43 }
 0x81e   :  { %1649 = vrot.lane.b32.xlu1 %v1647_v56, %s2281_s0 }
 0x823   :  { %v1734_v13 = vpop.f32.mrf.mxu2 }
 0x824   :  { %v1758_v28 = vsel %vm365_vm4, %v1734_v13, -inf }
 0x82b   :  { %v1737_v62 = vpop.f32.mrf.mxu2 }
 0x82c   :  { %v1759_v23 = vsel %vm365_vm4, %v1737_v62, -inf }
 0x833   :  { %v1740_v20 = vpop.f32.mrf.mxu2 }
 0x834   :  { %v1760_v29 = vsel %vm365_vm4, %v1740_v20, -inf }
 0x83b   :  { %v1743_v59 = vpop.f32.mrf.mxu2 }
 0x83c   :  { %v1761_v22 = vsel %vm365_vm4, %v1743_v59, -inf }
 0x843   :  { %v1746_v57 = vpop.f32.mrf.mxu2 }
 0x844   :  { %v1762_v42 = vsel %vm365_vm4, %v1746_v57, -inf }
 0x845   :  { %v1763_v32 = vmax.f32 %v1758_v28, %v1762_v42 }
 0x84b   :  { %v1749_v55 = vpop.f32.mrf.mxu2 }
 0x84c   :  { %v1764_v40 = vsel %vm365_vm4, %v1749_v55, -inf }
 0x84d   :  { %v1765_v27 = vmax.f32 %v1759_v23, %v1764_v40 }
 0x84f   :  { %v1770_v24 = vmax.f32 %v1763_v32, %v1765_v27 }
 0x853   :  { %v1752_v54 = vpop.f32.mrf.mxu2 }
 0x854   :  { %v1766_v34 = vsel %vm365_vm4, %v1752_v54, -inf }
 0x855   :  { %v1767_v26 = vmax.f32 %v1760_v29, %v1766_v34  ;;  %v1202_v34 = vrot.slane %v2572_v2, 4 }
 0x85b   :  { %v1755_v44 = vpop.f32.mrf.mxu2 }
 0x85c   :  { %v1768_v14 = vsel %vm365_vm4, %v1755_v44, -inf }
 0x85d   :  { %v1769_v21 = vmax.f32 %v1761_v22, %v1768_v14 }
 0x85f   :  { %v1771_v46 = vmax.f32 %v1767_v26, %v1769_v21 }
 0x861   :  { %v1772_v41 = vmax.f32 %v1770_v24, %v1771_v46 }
 0x863   :  { %v1773_v45 = vrot.slane %v1772_v41, 4 }
 0x865   :  { %v1774_v16 = vmax.f32 %v1772_v41, %v1773_v45 }
 0x867   :  { %v1775_v19 = vrot.slane %v1774_v16, 2 }
 0x869   :  { %v1776_v31 = vmax.f32 %v1774_v16, %v1775_v19 }
 0x86b   :  { %v1777_v0 = vrot.slane %v1776_v31, 1 }
 0x86d   :  { %v1778_v33 = vmax.f32 %v1776_v31, %v1777_v0 }
 0x86f   :  { %v1779_v3 = vsub.f32 %v1734_v13, %v1778_v33  ;;  %v1780_v6 = vsub.f32 %v1737_v62, %v1778_v33  ;;  %v1781_v35 = vsub.f32 %v1740_v20, %v1778_v33  ;;  %v1782_v5 = vsub.f32 %v1743_v59, %v1778_v33 }
 0x870   :  { %v1783_v8 = vsub.f32 %v1746_v57, %v1778_v33  ;;  %v1784_v37 = vsub.f32 %v1749_v55, %v1778_v33  ;;  %v1786_v17 = vsub.f32 %v1755_v44, %v1778_v33  ;;  %v1785_v48 = vsub.f32 %v1752_v54, %v1778_v33  ;;  %v1829_v55 = vpop.permute.xlu1 %1828 }
 0x871   :  { %v1787_v15 = vmul.f32 1.442695, %v1779_v3  ;;  %v1789_v38 = vmul.f32 1.442695, %v1780_v6  ;;  %v1791_v36 = vmul.f32 1.442695, %v1781_v35  ;;  %v1203_v44 = vadd.f32 %v1202_v34, %v2572_v2 }
 0x872   :  { %v1793_v47 = vmul.f32 1.442695, %v1782_v5  ;;  %v1795_v50 = vmul.f32 1.442695, %v1783_v8  ;;  %v1797_v25 = vmul.f32 1.442695, %v1784_v37 }
 0x873   :  { %2176 = vpow2.f32 %v1787_v15  ;;  %v1801_v52 = vmul.f32 1.442695, %v1786_v17  ;;  %v1799_v61 = vmul.f32 1.442695, %v1785_v48  ;;  %v1204_v29 = vrot.slane %v1203_v44, 2  ;;  %v54_v6 = vld [vmem:[#allocation6 + $0x60] sm:$0xff] }
 0x874   :  { %2178 = vpow2.f32 %v1789_v38  ;;  %v56_v35 = vld [vmem:[#allocation6 + $0x70] sm:$0xff]  ;;  %v1859_v38 = vld [vmem:[#allocation2 + $0x8] sm:$0xff]  ;;  %v2197_v17 = vld [vmem:[#allocation6 + $0x78] sm:$0xff] }
 0x875   :  { %2180 = vpow2.f32 %v1791_v36  ;;  %v1205_v14 = vadd.f32 %v1204_v29, %v1203_v44 }
 0x876   :  { %2182 = vpow2.f32 %v1793_v47 }
 0x877   :  { %2184 = vpow2.f32 %v1795_v50  ;;  %v1206_v26 = vrot.slane %v1205_v14, 1 }
 0x878   :  { %2186 = vpow2.f32 %v1797_v25  ;;  %v2794_v25 = vld [vmem:[#allocation15_spill] sm:$0xff] }
 0x879   :  { %v2177_v7 = vpop.eup %2176  ;;  %2188 = vpow2.f32 %v1801_v52  ;;  %v1207_v21 = vadd.f32 %v1206_v26, %v1205_v14  ;;  %v2795_v52 = vmax.f32 %v2794_v25, 0.0 }
 0x87a   :  { %v2179_v53 = vpop.eup %2178  ;;  %v1803_v10 = vsel %vm365_vm4, %v2177_v7, 0.0  ;;  %2190 = vpow2.f32 %v1799_v61 }
 0x87b   :  { %v2181_v18 = vpop.eup %2180  ;;  %v1804_v49 = vsel %vm365_vm4, %v2179_v53, 0.0 }
 0x87c   :  { %v2183_v9 = vpop.eup %2182  ;;  %v1805_v12 = vadd.f32 %v1804_v49, %v1803_v10  ;;  %v1806_v11 = vsel %vm365_vm4, %v2181_v18, 0.0 }
 0x87d   :  { %v2185_v51 = vpop.eup %2184  ;;  %v1808_v63 = vsel %vm365_vm4, %v2183_v9, 0.0 }
 0x87e   :  { %v1807_v30 = vadd.f32 %v1806_v11, %v1805_v12  ;;  %v2187_v58 = vpop.eup %2186  ;;  %v1810_v43 = vsel %vm365_vm4, %v2185_v51, 0.0 }
 0x87f   :  { %v2189_v1 = vpop.eup %2188  ;;  %v1812_v13 = vsel %vm365_vm4, %v2187_v58, 0.0 }
 0x880   :  { %v1809_v4 = vadd.f32 %v1808_v63, %v1807_v30  ;;  %1840 = vmatpush.msrb.mxu3 %v2189_v1  ;;  %v2191_v39 = vpop.eup %2190  ;;  %v1816_v57 = vsel %vm365_vm4, %v2189_v1, 0.0  ;;  %v2798_v30 = vld [vmem:[#allocation12_spill] sm:$0xff] }
 0x881   :  { %v1814_v20 = vsel %vm365_vm4, %v2191_v39, 0.0 }
 0x882   :  { %v1811_v56 = vadd.f32 %v1810_v43, %v1809_v4  ;;  %1841 = vmatpush.msrb.mxu3 %v2191_v39  ;;  %v2800_v39 = vld [vmem:[#allocation13_spill] sm:$0xff] }
 0x884   :  { %v1813_v62 = vadd.f32 %v1812_v13, %v1811_v56  ;;  %1842 = vmatpush.msrb.mxu3 %v2187_v58  ;;  %v2799_v58 = vmax.f32 %v2798_v30, 0.0  ;;  %v2801_v56 = vmax.f32 %v2800_v39, 0.0 }
 0x886   :  { %v1815_v59 = vadd.f32 %v1814_v20, %v1813_v62  ;;  %1843 = vmatpush.msrb.mxu3 %v2185_v51 }
 0x888   :  { %v1817_v54 = vadd.f32 %v1816_v57, %v1815_v59  ;;  %1844 = vmatpush.msrb.mxu3 %v2183_v9 }
 0x88a   :  { %1845 = vmatpush.msrb.mxu3 %v2181_v18  ;;  %v1818_v23 = vrot.slane %v1817_v54, 4  ;;  %v2796_v18 = vld [vmem:[#allocation14_spill] sm:$0xff] }
 0x88b   :  { %v2797_v49 = vmax.f32 %v2796_v18, 0.0 }
 0x88c   :  { %1846 = vmatpush.msrb.mxu3 %v2179_v53  ;;  %v1819_v42 = vadd.f32 %v1818_v23, %v1817_v54 }
 0x88e   :  { %1847 = vmatpush.msrb.mxu3 %v2177_v7  ;;  %v1820_v27 = vrot.slane %v1819_v42, 2  ;;  %v1870_v7 = vpop.permute.xlu0 %1869 }
 0x88f   :  { %2035 = vmatmul.msk.f32.vlgmr.msrb.gmra.mxu3 %vm365_vm4, %v1829_v55 }
 0x890   :  { %v1650_v40 = vpop.permute.xlu1 %1649  ;;  %v1821_v28 = vadd.f32 %v1820_v27, %v1819_v42 }
 0x891   :  { %1652 = vst.msk [vmem:[#allocation2 + $0x10] sm:$0xff] %vm1241_vm5, %v1650_v40 }
 0x892   :  { %v1822_v22 = vrot.slane %v1821_v28, 1 }
 0x894   :  { %v1823_v32 = vadd.f32 %v1822_v22, %v1821_v28 }
 0x896   :  { %2192 = vrcp.f32 %v1823_v32  ;;  %v1880_v1 = vpop.permute.xlu0 %1879 }
 0x897   :  { %2194 = vrcp.f32 %v1207_v21 }
 0x898   :  { %v1860_v15 = vld [vmem:[#allocation2 + $0x10] sm:$0xff] }
 0x89c   :  { %v2193_v24 = vpop.eup %2192 }
 0x89d   :  { %v1825_v46 = vmul.f32 %v2193_v24, %v1823_v32  ;;  %v2195_v41 = vpop.eup %2194 }
 0x89e   :  { %v1209_v16 = vmul.f32 %v2195_v41, %v1207_v21 }
 0x89f   :  { %v1826_v45 = vsub.f32 2.0, %v1825_v46 }
 0x8a0   :  { %v1210_v0 = vsub.f32 2.0, %v1209_v16 }
 0x8a1   :  { %v1827_v19 = vmul.f32 %v2193_v24, %v1826_v45 }
 0x8a2   :  { %v1211_v2 = vmul.f32 %v2195_v41, %v1210_v0 }
 0x8a4   :  { %v1236_v3 = vmul.f32 %v2671_v60, %v1211_v2  ;;  %v2196_v60 = vld [vmem:[#allocation6 + $0x68] sm:$0xff] }
 0x912   :  { %v1849_v31 = vpop.f32.mrf.mxu3 }
 0x913   :  { %v1852_v33 = vmul.f32 %v1849_v31, %v1827_v19 }
 0x915   :  { %1854 = vrot.lane.b32.xlu1 %v1852_v33, %s2281_s0 }
 0x91d   :  { %1238 = vrot.lane.b32.xlu1 %v1236_v3, %s2281_s0 }
 0x925   :  { %1864 = vperm.xlu1 %2050, %v54_v6  }
 0x92d   :  { %1874 = vperm.xlu1 %2050, %v56_v35  }
 0x987   :  { %v1855_v5 = vpop.permute.xlu1 %1854 }
 0x988   :  { %1857 = vst.msk [vmem:[#allocation2 + $0x18] sm:$0xff] %vm1241_vm5, %v1855_v5 }
 0x98f   :  { %v1239_v8 = vpop.permute.xlu1 %1238  ;;  %v1861_v37 = vld [vmem:[#allocation2 + $0x18] sm:$0xff] }
 0x990   :  { %1242 = vst.msk [vmem:[#allocation2] sm:$0xff] %vm1241_vm5, %v1239_v8  ;;  %1902 = vmatpush.msra.mxu3 %v1861_v37 }
 0x992   :  { %1903 = vmatpush.msra.mxu3 %v1860_v15 }
 0x994   :  { %1904 = vmatpush.msra.mxu3 %v1859_v38 }
 0x997   :  { %v1858_v36 = vld [vmem:[#allocation2] sm:$0xff]  ;;  %v1865_v47 = vpop.permute.xlu1 %1864 }
 0x998   :  { %1905 = vmatpush.msra.mxu3 %v1858_v36 }
 0x999   :  { %2036 = vmatmul.msk.f32.vlgmr.msra.gmra.mxu3 %vm189_vm2, %v54_v6 }
 0x99f   :  { %v1875_v12 = vpop.permute.xlu1 %1874 }
 0x9a1   :  { %2037 = vmatmul.msk.f32.gmra.mxu3 %vm189_vm2, %v2196_v60 }
 0x9a9   :  { %2038 = vmatmul.msk.f32.gmra.mxu3 %vm189_vm2, %v56_v35 }
 0x9b1   :  { %2039 = vmatmul.msk.f32.gmra.mxu3 %vm189_vm2, %v2197_v17 }
 0xa1c   :  { %v1907_v48 = vpop.f32.mrf.mxu3 }
 0xa1d   :  { %v1908_v50 = vadd.f32 %v1907_v48, %v1865_v47 }
 0xa1f   :  { %v1919_v61 = vadd.f32 %v1908_v50, %v2795_v52 }
 0xa21   :  { %1923 = vst [vmem:[#allocation8] sm:$0xff] %v1919_v61 }
 0xa24   :  { %v1910_v53 = vpop.f32.mrf.mxu3 }
 0xa25   :  { %v1911_v10 = vadd.f32 %v1910_v53, %v1870_v7 }
 0xa27   :  { %v1920_v9 = vadd.f32 %v1911_v10, %v2797_v49 }
 0xa29   :  { %1924 = vst [vmem:[#allocation8 + $0x8] sm:$0xff] %v1920_v9 }
 0xa2c   :  { %v1913_v11 = vpop.f32.mrf.mxu3 }
 0xa2d   :  { %v1914_v51 = vadd.f32 %v1913_v11, %v1875_v12 }
 0xa2f   :  { %v1921_v63 = vadd.f32 %v1914_v51, %v2799_v58 }
 0xa31   :  { %1925 = vst [vmem:[#allocation8 + $0x10] sm:$0xff] %v1921_v63 }
 0xa34   :  { %v1916_v4 = vpop.f32.mrf.mxu3 }
 0xa35   :  { %v1917_v43 = vadd.f32 %v1916_v4, %v1880_v1 }
 0xa37   :  { %v1922_v13 = vadd.f32 %v1917_v43, %v2801_v56 }
 0xa39   :  { %1926 = vst [vmem:[#allocation8 + $0x18] sm:$0xff] %v1922_v13 }
 0xa3a   :  { %1939 = dma.vmem_to_hbm [thread:$0]  %s1932_s21, 512, %s1934_s24, [#allocation5], %s2278_s19, %s2278_s19, %s2279_s20  }
 0xa3b   :  { %2274 = dma.done.wait [#allocation5], 512  }
 0xa3c   :  { %2275 = vsyncadd [#allocation5], 4294966784 }
 0xa3d   :  { %1944 = vsyncpa [#allocation4], 1 }
 0xa3e   :  { %1945 = vsyncpa [#allocation7], 1 }
 0xa3f   :  { %1946 = vsyncpa [#allocation5], 1 }

</bundles_post_ra>
